<compile_context>
chip_gen: v5e
topology: v5e:2x2
jax: 0.10.0
libtpu: 0.0.40
codegen_flags: <defaults>
</compile_context>

<pallas_src>
import functools

import jax
import jax.numpy as jnp
from jax.experimental import pallas as pl
from jax.experimental.pallas import tpu as pltpu


# Squeezed marker for size-1 batch dims in BlockSpecs (None is the legacy
# spelling, kept as a fallback for older jax).
_SQ = pl.Squeezed() if hasattr(pl, "Squeezed") else None


# --------------------------------------------------------------------------
# Wrapper-side layout helpers (pure data movement).
# --------------------------------------------------------------------------
def _im2col_wrap(x):
    """(N, C, H, W) -> (N, 9*C, H*W) circular-pad 3x3 im2col.

    Row k*C + c holds x[:, c, h + di - 1, w + dj - 1] (wrapped), k = di*3 + dj.
    This matches the conv weight re-laid-out as
    transpose(w, (0, 2, 3, 1)).reshape(C_out, 9*C).
    """
    N, C, H, W = x.shape
    xp = jnp.pad(x, ((0, 0), (0, 0), (1, 1), (1, 1)), mode="wrap")
    slabs = [xp[:, :, di:di + H, dj:dj + W]
             for di in range(3) for dj in range(3)]
    return jnp.stack(slabs, axis=1).reshape(N, 9 * C, H * W)


# --------------------------------------------------------------------------
# Kernels.
# --------------------------------------------------------------------------
def _te_mlp_kernel(t_ref, w1_ref, b1_ref, w2_ref, b2_ref, o_ref):
    """make_te time-embedding MLP: Linear -> SiLU -> Linear."""
    h = jnp.dot(t_ref[...], w1_ref[...],
                preferred_element_type=jnp.float32) + b1_ref[...]
    h = h * jax.nn.sigmoid(h)
    o = jnp.dot(h, w2_ref[...],
                preferred_element_type=jnp.float32) + b2_ref[...]
    o_ref[...] = o.astype(o_ref.dtype)


def _norm_conv_silu_kernel(*refs, eps, has_cbias, has_skip, matmul_dtype):
    """LayerNorm((C,H,W)) -> 3x3 circular conv -> SiLU for one sample.

    refs (inputs, then output):
      xi  (9C, HW)   im2col of one sample (lane-dense)
      g   (9C, HW)   im2col'd LayerNorm gamma
      bt  (9C, HW)   im2col'd LayerNorm beta
      w   (Cout, 9C) fused conv weight
      b   (Cout, 1)  conv bias
      [cb (9C, 1)]   per-(tap,channel) time-embedding bias   (has_cbias)
      [xs (C0, HW), ws (Cout, C0), bs (Cout, 1)]  fused 1x1 skip (has_skip)
      o   (Cout, HW) output
    """
    refs = list(refs)
    o_ref = refs.pop()
    xi_ref, g_ref, bt_ref, w_ref, b_ref = refs[:5]
    pos = 5
    if has_cbias:
        cb_ref = refs[pos]
        pos += 1
    if has_skip:
        xs_ref, ws_ref, bs_ref = refs[pos:pos + 3]

    xi = xi_ref[...].astype(jnp.float32)                     # (9C, HW)
    if has_cbias:
        xi = xi + cb_ref[...]                                # (9C, 1) lane bcast

    # LayerNorm over (C, H, W): every im2col tap slab is a circular
    # permutation of the sample, so whole-tile mean/var equal the per-sample
    # statistics exactly.  Two-pass centered variance (avoids E[x^2]-E[x]^2
    # cancellation) over a lane-dense tile; rsqrt goes to the EUP.
    mean = jnp.mean(xi)
    var = jnp.mean((xi - mean) ** 2)
    inv = jax.lax.rsqrt(var + eps)
    xn = (xi - mean) * inv * g_ref[...] + bt_ref[...]        # (9C, HW) f32

    # 3x3 circular conv == one fused-K MXU matmul; bf16 operands, f32 acc.
    y = jnp.dot(w_ref[...].astype(matmul_dtype), xn.astype(matmul_dtype),
                preferred_element_type=jnp.float32)
    y = y + b_ref[...]                                       # (Cout, 1) bcast
    y = y * jax.nn.sigmoid(y)                                # SiLU

    if has_skip:                                             # 1x1 skip conv + residual
        y = y + jnp.dot(ws_ref[...].astype(matmul_dtype),
                        xs_ref[...].astype(matmul_dtype),
                        preferred_element_type=jnp.float32) + bs_ref[...]

    o_ref[...] = y.astype(o_ref.dtype)


# --------------------------------------------------------------------------
# pallas_call wrappers.
# --------------------------------------------------------------------------
def _norm_conv_silu(x, gamma, beta, weight, bias, *, cbias=None, skip=None,
                    eps=1e-5, matmul_dtype=jnp.bfloat16):
    """One NormConv2d layer.  x: (N, C, H, W); gamma/beta: (C, H, W);
    weight: (C_out, C, 3, 3); bias: (C_out,).
    cbias: optional (N, C) per-channel bias added before the LayerNorm.
    skip:  optional (x_flat (N, C0, HW), w (C_out, C0), b (C_out, 1)) fused
    1x1-conv residual.  Returns (N, C_out, H, W)."""
    N, C, H, W = x.shape
    HW = H * W                        # lane axis; sized 256 here (multiple of 128)
    C_out = weight.shape[0]

    # Wrapper-side layout only: circular-pad im2col + weight re-layout.
    xi = _im2col_wrap(x)                                       # (N, 9C, HW)
    gi = _im2col_wrap(gamma[None])[0]                          # (9C, HW)
    bi = _im2col_wrap(beta[None])[0]                           # (9C, HW)
    w2 = jnp.transpose(weight, (0, 2, 3, 1)).reshape(C_out, 9 * C)
    b2 = bias.reshape(C_out, 1)

    inputs = [xi, gi, bi, w2, b2]
    in_specs = [
        pl.BlockSpec((_SQ, 9 * C, HW), lambda b: (b, 0, 0)),
        pl.BlockSpec((9 * C, HW), lambda b: (0, 0)),
        pl.BlockSpec((9 * C, HW), lambda b: (0, 0)),
        pl.BlockSpec((C_out, 9 * C), lambda b: (0, 0)),
        pl.BlockSpec((C_out, 1), lambda b: (0, 0)),
    ]
    if cbias is not None:
        # te[n, c] replicated to every tap slab: index k*C + c.
        cb = jnp.tile(cbias, (1, 9)).reshape(N, 9 * C, 1)
        inputs.append(cb)
        in_specs.append(pl.BlockSpec((_SQ, 9 * C, 1), lambda b: (b, 0, 0)))
    if skip is not None:
        xs, ws, bs = skip
        C0 = xs.shape[1]
        inputs += [xs, ws, bs]
        in_specs += [
            pl.BlockSpec((_SQ, C0, HW), lambda b: (b, 0, 0)),
            pl.BlockSpec((C_out, C0), lambda b: (0, 0)),
            pl.BlockSpec((C_out, 1), lambda b: (0, 0)),
        ]

    kernel = functools.partial(
        _norm_conv_silu_kernel, eps=eps, has_cbias=cbias is not None,
        has_skip=skip is not None, matmul_dtype=matmul_dtype)

    out = pl.pallas_call(
        kernel,
        out_shape=jax.ShapeDtypeStruct((N, C_out, HW), x.dtype),
        grid_spec=pltpu.PrefetchScalarGridSpec(
            num_scalar_prefetch=0,
            grid=(N,),                 # one sample per step (per-sample LN stats)
            in_specs=in_specs,
            out_specs=pl.BlockSpec((_SQ, C_out, HW), lambda b: (b, 0, 0)),
        ),
        compiler_params=pltpu.CompilerParams(
            dimension_semantics=("parallel",)),   # megacore shards samples
    )(*inputs)
    return out.reshape(N, C_out, H, W)


def mid_res_block(x, t, params, *, eps=1e-5, matmul_dtype=jnp.bfloat16):
    """MidResBlock forward: te MLP, 3x NormConv2d, fused 1x1 skip + residual."""
    N, C, H, W = x.shape
    HW = H * W
    p = params

    # Time-embedding MLP (tiny; single Pallas invocation, whole arrays in VMEM).
    te = pl.pallas_call(
        _te_mlp_kernel,
        out_shape=jax.ShapeDtypeStruct((N, C), jnp.float32),
    )(t, p["te_w1"], p["te_b1"].reshape(1, -1),
      p["te_w2"], p["te_b2"].reshape(1, -1))

    # Layer 1 (in_c -> in_c//2), te-bias add fused in-kernel.
    h = _norm_conv_silu(x, p["g1"], p["bt1"], p["w1"], p["b1"],
                        cbias=te, eps=eps, matmul_dtype=matmul_dtype)
    # Layer 2 (in_c//2 -> in_c//2).
    h = _norm_conv_silu(h, p["g2"], p["bt2"], p["w2"], p["b2"],
                        eps=eps, matmul_dtype=matmul_dtype)
    # Layer 3 (in_c//2 -> in_c), 1x1 skip conv on the ORIGINAL x + residual add
    # fused into the same kernel.
    skip = (x.reshape(N, C, HW),
            p["skip_w"].reshape(C, C),
            p["skip_b"].reshape(C, 1))
    h = _norm_conv_silu(h, p["g3"], p["bt3"], p["w3"], p["b3"],
                        skip=skip, eps=eps, matmul_dtype=matmul_dtype)
    # TODO(synk): nn.Dropout (only appended when dropout>0) and the optional
    # phi-embedding branch (has_phi=True) are disabled by default and omitted.
    return h


# --------------------------------------------------------------------------
# Pure-JAX reference (f32) and self-test.
# --------------------------------------------------------------------------
def _reference(x, t, p, eps=1e-5):
    h = t @ p["te_w1"] + p["te_b1"]
    h = h * jax.nn.sigmoid(h)
    te = h @ p["te_w2"] + p["te_b2"]
    z = x + te[:, :, None, None]

    def norm_conv(z, g, bt, w, b):
        mean = z.mean(axis=(1, 2, 3), keepdims=True)
        var = ((z - mean) ** 2).mean(axis=(1, 2, 3), keepdims=True)
        zn = (z - mean) / jnp.sqrt(var + eps) * g[None] + bt[None]
        zp = jnp.pad(zn, ((0, 0), (0, 0), (1, 1), (1, 1)), mode="wrap")
        y = jax.lax.conv_general_dilated(
            zp, w, (1, 1), "VALID",
            dimension_numbers=("NCHW", "OIHW", "NCHW"))
        y = y + b[None, :, None, None]
        return y * jax.nn.sigmoid(y)

    h1 = norm_conv(z, p["g1"], p["bt1"], p["w1"], p["b1"])
    h2 = norm_conv(h1, p["g2"], p["bt2"], p["w2"], p["b2"])
    h3 = norm_conv(h2, p["g3"], p["bt3"], p["w3"], p["b3"])
    sk = jax.lax.conv_general_dilated(
        x, p["skip_w"], (1, 1), "VALID",
        dimension_numbers=("NCHW", "OIHW", "NCHW"))
    sk = sk + p["skip_b"][None, :, None, None]
    return h3 + sk


if __name__ == "__main__":
    N, C, H, W = 2, 4, 16, 16        # batch, in_c, size, size
    Cm = C // 2                      # in_c // 2
    Dt = 32                          # time_emb_dim

    keys = iter(jax.random.split(jax.random.PRNGKey(0), 24))
    f32 = jnp.float32

    x = jax.random.normal(next(keys), (N, C, H, W), f32)
    t = jax.random.normal(next(keys), (N, Dt), f32)

    params = {
        # make_te: Linear(Dt, C) -> SiLU -> Linear(C, C); weights stored (in, out).
        "te_w1": 0.3 * jax.random.normal(next(keys), (Dt, C), f32),
        "te_b1": 0.1 * jax.random.normal(next(keys), (C,), f32),
        "te_w2": 0.3 * jax.random.normal(next(keys), (C, C), f32),
        "te_b2": 0.1 * jax.random.normal(next(keys), (C,), f32),
        # NormConv2d 1: LN((C,H,W)), Conv C -> C//2.
        "g1": 1.0 + 0.1 * jax.random.normal(next(keys), (C, H, W), f32),
        "bt1": 0.1 * jax.random.normal(next(keys), (C, H, W), f32),
        "w1": 0.1 * jax.random.normal(next(keys), (Cm, C, 3, 3), f32),
        "b1": 0.1 * jax.random.normal(next(keys), (Cm,), f32),
        # NormConv2d 2: LN((C//2,H,W)), Conv C//2 -> C//2.
        "g2": 1.0 + 0.1 * jax.random.normal(next(keys), (Cm, H, W), f32),
        "bt2": 0.1 * jax.random.normal(next(keys), (Cm, H, W), f32),
        "w2": 0.1 * jax.random.normal(next(keys), (Cm, Cm, 3, 3), f32),
        "b2": 0.1 * jax.random.normal(next(keys), (Cm,), f32),
        # NormConv2d 3: LN((C//2,H,W)), Conv C//2 -> C.
        "g3": 1.0 + 0.1 * jax.random.normal(next(keys), (Cm, H, W), f32),
        "bt3": 0.1 * jax.random.normal(next(keys), (Cm, H, W), f32),
        "w3": 0.1 * jax.random.normal(next(keys), (C, Cm, 3, 3), f32),
        "b3": 0.1 * jax.random.normal(next(keys), (C,), f32),
        # skip: Conv2d(C, C, 1).
        "skip_w": 0.3 * jax.random.normal(next(keys), (C, C, 1, 1), f32),
        "skip_b": 0.1 * jax.random.normal(next(keys), (C,), f32),
    }

    run_bf16 = jax.jit(functools.partial(mid_res_block, matmul_dtype=jnp.bfloat16))
    run_f32 = jax.jit(functools.partial(mid_res_block, matmul_dtype=jnp.float32))

    out = jax.block_until_ready(run_bf16(x, t, params))      # perf default path
    out_f32 = jax.block_until_ready(run_f32(x, t, params))   # exactness path
    ref = _reference(x, t, params)

    assert out.shape == (N, C, H, W)
    # f32-operand MXU path tracks the pure-JAX reference tightly.
    assert jnp.allclose(out_f32, ref, rtol=1e-3, atol=1e-3), (
        float(jnp.max(jnp.abs(out_f32 - ref))))
    # bf16-operand / f32-accumulation path: small bounded rounding error
    # (values are O(1) after LayerNorm; a layout/semantics bug would be O(0.5+)).
    assert jnp.allclose(out, ref, rtol=5e-2, atol=5e-2), (
        float(jnp.max(jnp.abs(out - ref))))
    print("KERNEL_OK")
</pallas_src>

<mosaic_0001>
module attributes {stable_mosaic.version = 11 : i64} {
  func.func @_te_mlp_kernel(%arg0: memref<2x32xf32, #tpu.memory_space<vmem>>, %arg1: memref<32x4xf32, #tpu.memory_space<vmem>>, %arg2: memref<1x4xf32, #tpu.memory_space<vmem>>, %arg3: memref<4x4xf32, #tpu.memory_space<vmem>>, %arg4: memref<1x4xf32, #tpu.memory_space<vmem>>, %arg5: memref<2x4xf32, #tpu.memory_space<vmem>>) attributes {dimension_semantics = [], scalar_prefetch = 0 : i64, scratch_operands = 0 : i64, tpu.core_type = #tpu.core_type<tc>} {
    %c0 = arith.constant 0 : index
    %c0_0 = arith.constant 0 : index
    %0 = vector.load %arg0[%c0, %c0_0] : memref<2x32xf32, #tpu.memory_space<vmem>>, vector<2x32xf32>
    %c0_1 = arith.constant 0 : index
    %c0_2 = arith.constant 0 : index
    %1 = vector.load %arg1[%c0_1, %c0_2] : memref<32x4xf32, #tpu.memory_space<vmem>>, vector<32x4xf32>
    %cst = arith.constant dense<0.000000e+00> : vector<2x4xf32>
    %2 = tpu.matmul %0, %1, %cst {dimension_numbers = #tpu.dot_dimension_numbers<[1], [0], [0], [1], [0, 0, 1, 1], [], []>} : vector<2x32xf32>, vector<32x4xf32>, vector<2x4xf32> -> vector<2x4xf32>
    %c0_3 = arith.constant 0 : index
    %c0_4 = arith.constant 0 : index
    %3 = vector.load %arg2[%c0_3, %c0_4] : memref<1x4xf32, #tpu.memory_space<vmem>>, vector<1x4xf32>
    %4 = vector.broadcast %3 : vector<1x4xf32> to vector<2x4xf32>
    %5 = arith.addf %2, %4 : vector<2x4xf32>
    %6 = arith.negf %5 : vector<2x4xf32>
    %7 = math.exp %6 : vector<2x4xf32>
    %cst_5 = arith.constant 1.000000e+00 : f32
    %8 = vector.broadcast %cst_5 : f32 to vector<2x4xf32>
    %9 = arith.addf %8, %7 : vector<2x4xf32>
    %10 = arith.divf %8, %9 : vector<2x4xf32>
    %11 = arith.mulf %5, %10 : vector<2x4xf32>
    %c0_6 = arith.constant 0 : index
    %c0_7 = arith.constant 0 : index
    %12 = vector.load %arg3[%c0_6, %c0_7] : memref<4x4xf32, #tpu.memory_space<vmem>>, vector<4x4xf32>
    %cst_8 = arith.constant dense<0.000000e+00> : vector<2x4xf32>
    %13 = tpu.matmul %11, %12, %cst_8 {dimension_numbers = #tpu.dot_dimension_numbers<[1], [0], [0], [1], [0, 0, 1, 1], [], []>} : vector<2x4xf32>, vector<4x4xf32>, vector<2x4xf32> -> vector<2x4xf32>
    %c0_9 = arith.constant 0 : index
    %c0_10 = arith.constant 0 : index
    %14 = vector.load %arg4[%c0_9, %c0_10] : memref<1x4xf32, #tpu.memory_space<vmem>>, vector<1x4xf32>
    %15 = vector.broadcast %14 : vector<1x4xf32> to vector<2x4xf32>
    %16 = arith.addf %13, %15 : vector<2x4xf32>
    %c0_11 = arith.constant 0 : index
    %c0_12 = arith.constant 0 : index
    %17 = vector.load %arg5[%c0_11, %c0_12] : memref<2x4xf32, #tpu.memory_space<vmem>>, vector<2x4xf32>
    tpu.vector_store %arg5[%c0_11, %c0_12], %16 {strides = array<i32>} : memref<2x4xf32, #tpu.memory_space<vmem>>, vector<2x4xf32>,
    return
  }
}

module attributes {stable_mosaic.version = 11 : i64} {
  func.func @_norm_conv_silu_kernel(%arg0: i32, %arg1: memref<1x36x256xf32, #tpu.memory_space<vmem>>, %arg2: memref<36x256xf32, #tpu.memory_space<vmem>>, %arg3: memref<36x256xf32, #tpu.memory_space<vmem>>, %arg4: memref<2x36xf32, #tpu.memory_space<vmem>>, %arg5: memref<2x1xf32, #tpu.memory_space<vmem>>, %arg6: memref<1x36x1xf32, #tpu.memory_space<vmem>>, %arg7: memref<1x2x256xf32, #tpu.memory_space<vmem>>) attributes {dimension_semantics = [#tpu.dimension_semantics<parallel>], iteration_bounds = array<i64: 2>, scalar_prefetch = 0 : i64, scratch_operands = 0 : i64, tpu.core_type = #tpu.core_type<tc>, window_params = [{transform_indices = @transform_0, window_bounds = array<i64: 1, 36, 256>}, {pipeline_mode = #tpu.pipeline_mode<synchronous>, transform_indices = @transform_1, window_bounds = array<i64: 36, 256>}, {pipeline_mode = #tpu.pipeline_mode<synchronous>, transform_indices = @transform_2, window_bounds = array<i64: 36, 256>}, {pipeline_mode = #tpu.pipeline_mode<synchronous>, transform_indices = @transform_3, window_bounds = array<i64: 2, 36>}, {pipeline_mode = #tpu.pipeline_mode<synchronous>, transform_indices = @transform_4, window_bounds = array<i64: 2, 1>}, {transform_indices = @transform_5, window_bounds = array<i64: 1, 36, 1>}, {transform_indices = @transform_6, window_bounds = array<i64: 1, 2, 256>}]} {
    %c0 = arith.constant 0 : index
    %c0_0 = arith.constant 0 : index
    %c0_1 = arith.constant 0 : index
    %0 = vector.load %arg1[%c0, %c0_0, %c0_1] : memref<1x36x256xf32, #tpu.memory_space<vmem>>, vector<1x36x256xf32>
    %1 = vector.shape_cast %0 : vector<1x36x256xf32> to vector<36x256xf32>
    %c0_2 = arith.constant 0 : index
    %c0_3 = arith.constant 0 : index
    %c0_4 = arith.constant 0 : index
    %2 = vector.load %arg6[%c0_2, %c0_3, %c0_4] : memref<1x36x1xf32, #tpu.memory_space<vmem>>, vector<1x36x1xf32>
    %3 = vector.shape_cast %2 : vector<1x36x1xf32> to vector<36x1xf32>
    %4 = vector.broadcast %3 : vector<36x1xf32> to vector<36x256xf32>
    %5 = arith.addf %1, %4 : vector<36x256xf32>
    %6 = vector.shape_cast %5 : vector<36x256xf32> to vector<1x36x256xf32>
    %cst = arith.constant dense<0.000000e+00> : vector<1xf32>
    %7 = vector.multi_reduction <add>, %6, %cst [1, 2] : vector<1x36x256xf32> to vector<1xf32>
    %8 = vector.shape_cast %7 : vector<1xf32> to vector<1x1x1xf32>
    %9 = vector.extract %8[0, 0, 0] : f32 from vector<1x1x1xf32>
    %cst_5 = arith.constant 9.216000e+03 : f32
    %10 = arith.divf %9, %cst_5 : f32
    %11 = vector.broadcast %10 : f32 to vector<36x256xf32>
    %12 = arith.subf %5, %11 : vector<36x256xf32>
    %13 = arith.mulf %12, %12 : vector<36x256xf32>
    %14 = vector.shape_cast %13 : vector<36x256xf32> to vector<1x36x256xf32>
    %cst_6 = arith.constant dense<0.000000e+00> : vector<1xf32>
    %15 = vector.multi_reduction <add>, %14, %cst_6 [1, 2] : vector<1x36x256xf32> to vector<1xf32>
    %16 = vector.shape_cast %15 : vector<1xf32> to vector<1x1x1xf32>
    %17 = vector.extract %16[0, 0, 0] : f32 from vector<1x1x1xf32>
    %cst_7 = arith.constant 9.216000e+03 : f32
    %18 = arith.divf %17, %cst_7 : f32
    %cst_8 = arith.constant 9.99999974E-6 : f32
    %19 = arith.addf %18, %cst_8 : f32
    %20 = math.rsqrt %19 : f32
    %21 = vector.broadcast %10 : f32 to vector<36x256xf32>
    %22 = arith.subf %5, %21 : vector<36x256xf32>
    %23 = vector.broadcast %20 : f32 to vector<36x256xf32>
    %24 = arith.mulf %22, %23 : vector<36x256xf32>
    %c0_9 = arith.constant 0 : index
    %c0_10 = arith.constant 0 : index
    %25 = vector.load %arg2[%c0_9, %c0_10] : memref<36x256xf32, #tpu.memory_space<vmem>>, vector<36x256xf32>
    %26 = arith.mulf %24, %25 : vector<36x256xf32>
    %c0_11 = arith.constant 0 : index
    %c0_12 = arith.constant 0 : index
    %27 = vector.load %arg3[%c0_11, %c0_12] : memref<36x256xf32, #tpu.memory_space<vmem>>, vector<36x256xf32>
    %28 = arith.addf %26, %27 : vector<36x256xf32>
    %c0_13 = arith.constant 0 : index
    %c0_14 = arith.constant 0 : index
    %29 = vector.load %arg4[%c0_13, %c0_14] : memref<2x36xf32, #tpu.memory_space<vmem>>, vector<2x36xf32>
    %30 = arith.truncf %29 : vector<2x36xf32> to vector<2x36xbf16>
    %31 = arith.truncf %28 : vector<36x256xf32> to vector<36x256xbf16>
    %cst_15 = arith.constant dense<0.000000e+00> : vector<2x256xf32>
    %32 = tpu.matmul %30, %31, %cst_15 {dimension_numbers = #tpu.dot_dimension_numbers<[1], [0], [0], [1], [0, 0, 1, 1], [], []>} : vector<2x36xbf16>, vector<36x256xbf16>, vector<2x256xf32> -> vector<2x256xf32>
    %c0_16 = arith.constant 0 : index
    %c0_17 = arith.constant 0 : index
    %33 = vector.load %arg5[%c0_16, %c0_17] : memref<2x1xf32, #tpu.memory_space<vmem>>, vector<2x1xf32>
    %34 = vector.broadcast %33 : vector<2x1xf32> to vector<2x256xf32>
    %35 = arith.addf %32, %34 : vector<2x256xf32>
    %36 = arith.negf %35 : vector<2x256xf32>
    %37 = math.exp %36 : vector<2x256xf32>
    %cst_18 = arith.constant 1.000000e+00 : f32
    %38 = vector.broadcast %cst_18 : f32 to vector<2x256xf32>
    %39 = arith.addf %38, %37 : vector<2x256xf32>
    %40 = arith.divf %38, %39 : vector<2x256xf32>
    %41 = arith.mulf %35, %40 : vector<2x256xf32>
    %c0_19 = arith.constant 0 : index
    %c0_20 = arith.constant 0 : index
    %c0_21 = arith.constant 0 : index
    %42 = vector.load %arg7[%c0_19, %c0_20, %c0_21] : memref<1x2x256xf32, #tpu.memory_space<vmem>>, vector<1x2x256xf32>
    %43 = vector.shape_cast %42 : vector<1x2x256xf32> to vector<2x256xf32>
    %44 = vector.shape_cast %41 : vector<2x256xf32> to vector<1x2x256xf32>
    tpu.vector_store %arg7[%c0_19, %c0_20, %c0_21], %44 {strides = array<i32>} : memref<1x2x256xf32, #tpu.memory_space<vmem>>, vector<1x2x256xf32>,
    return
  }
  func.func @transform_0(%arg0: i32) -> (i32, i32, i32) {
    %c0_i32 = arith.constant 0 : i32
    %c0_i32_0 = arith.constant 0 : i32
    %c0_i32_1 = arith.constant 0 : i32
    return %arg0, %c0_i32, %c0_i32_0 : i32, i32, i32
  }
  func.func @transform_1(%arg0: i32) -> (i32, i32) {
    %c0_i32 = arith.constant 0 : i32
    %c0_i32_0 = arith.constant 0 : i32
    %c0_i32_1 = arith.constant 0 : i32
    return %c0_i32, %c0_i32_0 : i32, i32
  }
  func.func @transform_2(%arg0: i32) -> (i32, i32) {
    %c0_i32 = arith.constant 0 : i32
    %c0_i32_0 = arith.constant 0 : i32
    %c0_i32_1 = arith.constant 0 : i32
    return %c0_i32, %c0_i32_0 : i32, i32
  }
  func.func @transform_3(%arg0: i32) -> (i32, i32) {
    %c0_i32 = arith.constant 0 : i32
    %c0_i32_0 = arith.constant 0 : i32
    %c0_i32_1 = arith.constant 0 : i32
    return %c0_i32, %c0_i32_0 : i32, i32
  }
  func.func @transform_4(%arg0: i32) -> (i32, i32) {
    %c0_i32 = arith.constant 0 : i32
    %c0_i32_0 = arith.constant 0 : i32
    %c0_i32_1 = arith.constant 0 : i32
    return %c0_i32, %c0_i32_0 : i32, i32
  }
  func.func @transform_5(%arg0: i32) -> (i32, i32, i32) {
    %c0_i32 = arith.constant 0 : i32
    %c0_i32_0 = arith.constant 0 : i32
    %c0_i32_1 = arith.constant 0 : i32
    return %arg0, %c0_i32, %c0_i32_0 : i32, i32, i32
  }
  func.func @transform_6(%arg0: i32) -> (i32, i32, i32) {
    %c0_i32 = arith.constant 0 : i32
    %c0_i32_0 = arith.constant 0 : i32
    %c0_i32_1 = arith.constant 0 : i32
    return %arg0, %c0_i32, %c0_i32_0 : i32, i32, i32
  }
}

module attributes {stable_mosaic.version = 11 : i64} {
  func.func @_norm_conv_silu_kernel(%arg0: i32, %arg1: memref<1x18x256xf32, #tpu.memory_space<vmem>>, %arg2: memref<18x256xf32, #tpu.memory_space<vmem>>, %arg3: memref<18x256xf32, #tpu.memory_space<vmem>>, %arg4: memref<2x18xf32, #tpu.memory_space<vmem>>, %arg5: memref<2x1xf32, #tpu.memory_space<vmem>>, %arg6: memref<1x2x256xf32, #tpu.memory_space<vmem>>) attributes {dimension_semantics = [#tpu.dimension_semantics<parallel>], iteration_bounds = array<i64: 2>, scalar_prefetch = 0 : i64, scratch_operands = 0 : i64, tpu.core_type = #tpu.core_type<tc>, window_params = [{transform_indices = @transform_0, window_bounds = array<i64: 1, 18, 256>}, {pipeline_mode = #tpu.pipeline_mode<synchronous>, transform_indices = @transform_1, window_bounds = array<i64: 18, 256>}, {pipeline_mode = #tpu.pipeline_mode<synchronous>, transform_indices = @transform_2, window_bounds = array<i64: 18, 256>}, {pipeline_mode = #tpu.pipeline_mode<synchronous>, transform_indices = @transform_3, window_bounds = array<i64: 2, 18>}, {pipeline_mode = #tpu.pipeline_mode<synchronous>, transform_indices = @transform_4, window_bounds = array<i64: 2, 1>}, {transform_indices = @transform_5, window_bounds = array<i64: 1, 2, 256>}]} {
    %c0 = arith.constant 0 : index
    %c0_0 = arith.constant 0 : index
    %c0_1 = arith.constant 0 : index
    %0 = vector.load %arg1[%c0, %c0_0, %c0_1] : memref<1x18x256xf32, #tpu.memory_space<vmem>>, vector<1x18x256xf32>
    %1 = vector.shape_cast %0 : vector<1x18x256xf32> to vector<18x256xf32>
    %2 = vector.shape_cast %1 : vector<18x256xf32> to vector<1x18x256xf32>
    %cst = arith.constant dense<0.000000e+00> : vector<1xf32>
    %3 = vector.multi_reduction <add>, %2, %cst [1, 2] : vector<1x18x256xf32> to vector<1xf32>
    %4 = vector.shape_cast %3 : vector<1xf32> to vector<1x1x1xf32>
    %5 = vector.extract %4[0, 0, 0] : f32 from vector<1x1x1xf32>
    %cst_2 = arith.constant 4.608000e+03 : f32
    %6 = arith.divf %5, %cst_2 : f32
    %7 = vector.broadcast %6 : f32 to vector<18x256xf32>
    %8 = arith.subf %1, %7 : vector<18x256xf32>
    %9 = arith.mulf %8, %8 : vector<18x256xf32>
    %10 = vector.shape_cast %9 : vector<18x256xf32> to vector<1x18x256xf32>
    %cst_3 = arith.constant dense<0.000000e+00> : vector<1xf32>
    %11 = vector.multi_reduction <add>, %10, %cst_3 [1, 2] : vector<1x18x256xf32> to vector<1xf32>
    %12 = vector.shape_cast %11 : vector<1xf32> to vector<1x1x1xf32>
    %13 = vector.extract %12[0, 0, 0] : f32 from vector<1x1x1xf32>
    %cst_4 = arith.constant 4.608000e+03 : f32
    %14 = arith.divf %13, %cst_4 : f32
    %cst_5 = arith.constant 9.99999974E-6 : f32
    %15 = arith.addf %14, %cst_5 : f32
    %16 = math.rsqrt %15 : f32
    %17 = vector.broadcast %6 : f32 to vector<18x256xf32>
    %18 = arith.subf %1, %17 : vector<18x256xf32>
    %19 = vector.broadcast %16 : f32 to vector<18x256xf32>
    %20 = arith.mulf %18, %19 : vector<18x256xf32>
    %c0_6 = arith.constant 0 : index
    %c0_7 = arith.constant 0 : index
    %21 = vector.load %arg2[%c0_6, %c0_7] : memref<18x256xf32, #tpu.memory_space<vmem>>, vector<18x256xf32>
    %22 = arith.mulf %20, %21 : vector<18x256xf32>
    %c0_8 = arith.constant 0 : index
    %c0_9 = arith.constant 0 : index
    %23 = vector.load %arg3[%c0_8, %c0_9] : memref<18x256xf32, #tpu.memory_space<vmem>>, vector<18x256xf32>
    %24 = arith.addf %22, %23 : vector<18x256xf32>
    %c0_10 = arith.constant 0 : index
    %c0_11 = arith.constant 0 : index
    %25 = vector.load %arg4[%c0_10, %c0_11] : memref<2x18xf32, #tpu.memory_space<vmem>>, vector<2x18xf32>
    %26 = arith.truncf %25 : vector<2x18xf32> to vector<2x18xbf16>
    %27 = arith.truncf %24 : vector<18x256xf32> to vector<18x256xbf16>
    %cst_12 = arith.constant dense<0.000000e+00> : vector<2x256xf32>
    %28 = tpu.matmul %26, %27, %cst_12 {dimension_numbers = #tpu.dot_dimension_numbers<[1], [0], [0], [1], [0, 0, 1, 1], [], []>} : vector<2x18xbf16>, vector<18x256xbf16>, vector<2x256xf32> -> vector<2x256xf32>
    %c0_13 = arith.constant 0 : index
    %c0_14 = arith.constant 0 : index
    %29 = vector.load %arg5[%c0_13, %c0_14] : memref<2x1xf32, #tpu.memory_space<vmem>>, vector<2x1xf32>
    %30 = vector.broadcast %29 : vector<2x1xf32> to vector<2x256xf32>
    %31 = arith.addf %28, %30 : vector<2x256xf32>
    %32 = arith.negf %31 : vector<2x256xf32>
    %33 = math.exp %32 : vector<2x256xf32>
    %cst_15 = arith.constant 1.000000e+00 : f32
    %34 = vector.broadcast %cst_15 : f32 to vector<2x256xf32>
    %35 = arith.addf %34, %33 : vector<2x256xf32>
    %36 = arith.divf %34, %35 : vector<2x256xf32>
    %37 = arith.mulf %31, %36 : vector<2x256xf32>
    %c0_16 = arith.constant 0 : index
    %c0_17 = arith.constant 0 : index
    %c0_18 = arith.constant 0 : index
    %38 = vector.load %arg6[%c0_16, %c0_17, %c0_18] : memref<1x2x256xf32, #tpu.memory_space<vmem>>, vector<1x2x256xf32>
    %39 = vector.shape_cast %38 : vector<1x2x256xf32> to vector<2x256xf32>
    %40 = vector.shape_cast %37 : vector<2x256xf32> to vector<1x2x256xf32>
    tpu.vector_store %arg6[%c0_16, %c0_17, %c0_18], %40 {strides = array<i32>} : memref<1x2x256xf32, #tpu.memory_space<vmem>>, vector<1x2x256xf32>,
    return
  }
  func.func @transform_0(%arg0: i32) -> (i32, i32, i32) {
    %c0_i32 = arith.constant 0 : i32
    %c0_i32_0 = arith.constant 0 : i32
    %c0_i32_1 = arith.constant 0 : i32
    return %arg0, %c0_i32, %c0_i32_0 : i32, i32, i32
  }
  func.func @transform_1(%arg0: i32) -> (i32, i32) {
    %c0_i32 = arith.constant 0 : i32
    %c0_i32_0 = arith.constant 0 : i32
    %c0_i32_1 = arith.constant 0 : i32
    return %c0_i32, %c0_i32_0 : i32, i32
  }
  func.func @transform_2(%arg0: i32) -> (i32, i32) {
    %c0_i32 = arith.constant 0 : i32
    %c0_i32_0 = arith.constant 0 : i32
    %c0_i32_1 = arith.constant 0 : i32
    return %c0_i32, %c0_i32_0 : i32, i32
  }
  func.func @transform_3(%arg0: i32) -> (i32, i32) {
    %c0_i32 = arith.constant 0 : i32
    %c0_i32_0 = arith.constant 0 : i32
    %c0_i32_1 = arith.constant 0 : i32
    return %c0_i32, %c0_i32_0 : i32, i32
  }
  func.func @transform_4(%arg0: i32) -> (i32, i32) {
    %c0_i32 = arith.constant 0 : i32
    %c0_i32_0 = arith.constant 0 : i32
    %c0_i32_1 = arith.constant 0 : i32
    return %c0_i32, %c0_i32_0 : i32, i32
  }
  func.func @transform_5(%arg0: i32) -> (i32, i32, i32) {
    %c0_i32 = arith.constant 0 : i32
    %c0_i32_0 = arith.constant 0 : i32
    %c0_i32_1 = arith.constant 0 : i32
    return %arg0, %c0_i32, %c0_i32_0 : i32, i32, i32
  }
}

module attributes {stable_mosaic.version = 11 : i64} {
  func.func @_norm_conv_silu_kernel(%arg0: i32, %arg1: memref<1x18x256xf32, #tpu.memory_space<vmem>>, %arg2: memref<18x256xf32, #tpu.memory_space<vmem>>, %arg3: memref<18x256xf32, #tpu.memory_space<vmem>>, %arg4: memref<4x18xf32, #tpu.memory_space<vmem>>, %arg5: memref<4x1xf32, #tpu.memory_space<vmem>>, %arg6: memref<1x4x256xf32, #tpu.memory_space<vmem>>, %arg7: memref<4x4xf32, #tpu.memory_space<vmem>>, %arg8: memref<4x1xf32, #tpu.memory_space<vmem>>, %arg9: memref<1x4x256xf32, #tpu.memory_space<vmem>>) attributes {dimension_semantics = [#tpu.dimension_semantics<parallel>], iteration_bounds = array<i64: 2>, scalar_prefetch = 0 : i64, scratch_operands = 0 : i64, tpu.core_type = #tpu.core_type<tc>, window_params = [{transform_indices = @transform_0, window_bounds = array<i64: 1, 18, 256>}, {pipeline_mode = #tpu.pipeline_mode<synchronous>, transform_indices = @transform_1, window_bounds = array<i64: 18, 256>}, {pipeline_mode = #tpu.pipeline_mode<synchronous>, transform_indices = @transform_2, window_bounds = array<i64: 18, 256>}, {pipeline_mode = #tpu.pipeline_mode<synchronous>, transform_indices = @transform_3, window_bounds = array<i64: 4, 18>}, {pipeline_mode = #tpu.pipeline_mode<synchronous>, transform_indices = @transform_4, window_bounds = array<i64: 4, 1>}, {transform_indices = @transform_5, window_bounds = array<i64: 1, 4, 256>}, {pipeline_mode = #tpu.pipeline_mode<synchronous>, transform_indices = @transform_6, window_bounds = array<i64: 4, 4>}, {pipeline_mode = #tpu.pipeline_mode<synchronous>, transform_indices = @transform_7, window_bounds = array<i64: 4, 1>}, {transform_indices = @transform_8, window_bounds = array<i64: 1, 4, 256>}]} {
    %c0 = arith.constant 0 : index
    %c0_0 = arith.constant 0 : index
    %c0_1 = arith.constant 0 : index
    %0 = vector.load %arg1[%c0, %c0_0, %c0_1] : memref<1x18x256xf32, #tpu.memory_space<vmem>>, vector<1x18x256xf32>
    %1 = vector.shape_cast %0 : vector<1x18x256xf32> to vector<18x256xf32>
    %2 = vector.shape_cast %1 : vector<18x256xf32> to vector<1x18x256xf32>
    %cst = arith.constant dense<0.000000e+00> : vector<1xf32>
    %3 = vector.multi_reduction <add>, %2, %cst [1, 2] : vector<1x18x256xf32> to vector<1xf32>
    %4 = vector.shape_cast %3 : vector<1xf32> to vector<1x1x1xf32>
    %5 = vector.extract %4[0, 0, 0] : f32 from vector<1x1x1xf32>
    %cst_2 = arith.constant 4.608000e+03 : f32
    %6 = arith.divf %5, %cst_2 : f32
    %7 = vector.broadcast %6 : f32 to vector<18x256xf32>
    %8 = arith.subf %1, %7 : vector<18x256xf32>
    %9 = arith.mulf %8, %8 : vector<18x256xf32>
    %10 = vector.shape_cast %9 : vector<18x256xf32> to vector<1x18x256xf32>
    %cst_3 = arith.constant dense<0.000000e+00> : vector<1xf32>
    %11 = vector.multi_reduction <add>, %10, %cst_3 [1, 2] : vector<1x18x256xf32> to vector<1xf32>
    %12 = vector.shape_cast %11 : vector<1xf32> to vector<1x1x1xf32>
    %13 = vector.extract %12[0, 0, 0] : f32 from vector<1x1x1xf32>
    %cst_4 = arith.constant 4.608000e+03 : f32
    %14 = arith.divf %13, %cst_4 : f32
    %cst_5 = arith.constant 9.99999974E-6 : f32
    %15 = arith.addf %14, %cst_5 : f32
    %16 = math.rsqrt %15 : f32
    %17 = vector.broadcast %6 : f32 to vector<18x256xf32>
    %18 = arith.subf %1, %17 : vector<18x256xf32>
    %19 = vector.broadcast %16 : f32 to vector<18x256xf32>
    %20 = arith.mulf %18, %19 : vector<18x256xf32>
    %c0_6 = arith.constant 0 : index
    %c0_7 = arith.constant 0 : index
    %21 = vector.load %arg2[%c0_6, %c0_7] : memref<18x256xf32, #tpu.memory_space<vmem>>, vector<18x256xf32>
    %22 = arith.mulf %20, %21 : vector<18x256xf32>
    %c0_8 = arith.constant 0 : index
    %c0_9 = arith.constant 0 : index
    %23 = vector.load %arg3[%c0_8, %c0_9] : memref<18x256xf32, #tpu.memory_space<vmem>>, vector<18x256xf32>
    %24 = arith.addf %22, %23 : vector<18x256xf32>
    %c0_10 = arith.constant 0 : index
    %c0_11 = arith.constant 0 : index
    %25 = vector.load %arg4[%c0_10, %c0_11] : memref<4x18xf32, #tpu.memory_space<vmem>>, vector<4x18xf32>
    %26 = arith.truncf %25 : vector<4x18xf32> to vector<4x18xbf16>
    %27 = arith.truncf %24 : vector<18x256xf32> to vector<18x256xbf16>
    %cst_12 = arith.constant dense<0.000000e+00> : vector<4x256xf32>
    %28 = tpu.matmul %26, %27, %cst_12 {dimension_numbers = #tpu.dot_dimension_numbers<[1], [0], [0], [1], [0, 0, 1, 1], [], []>} : vector<4x18xbf16>, vector<18x256xbf16>, vector<4x256xf32> -> vector<4x256xf32>
    %c0_13 = arith.constant 0 : index
    %c0_14 = arith.constant 0 : index
    %29 = vector.load %arg5[%c0_13, %c0_14] : memref<4x1xf32, #tpu.memory_space<vmem>>, vector<4x1xf32>
    %30 = vector.broadcast %29 : vector<4x1xf32> to vector<4x256xf32>
    %31 = arith.addf %28, %30 : vector<4x256xf32>
    %32 = arith.negf %31 : vector<4x256xf32>
    %33 = math.exp %32 : vector<4x256xf32>
    %cst_15 = arith.constant 1.000000e+00 : f32
    %34 = vector.broadcast %cst_15 : f32 to vector<4x256xf32>
    %35 = arith.addf %34, %33 : vector<4x256xf32>
    %36 = arith.divf %34, %35 : vector<4x256xf32>
    %37 = arith.mulf %31, %36 : vector<4x256xf32>
    %c0_16 = arith.constant 0 : index
    %c0_17 = arith.constant 0 : index
    %38 = vector.load %arg7[%c0_16, %c0_17] : memref<4x4xf32, #tpu.memory_space<vmem>>, vector<4x4xf32>
    %39 = arith.truncf %38 : vector<4x4xf32> to vector<4x4xbf16>
    %c0_18 = arith.constant 0 : index
    %c0_19 = arith.constant 0 : index
    %c0_20 = arith.constant 0 : index
    %40 = vector.load %arg6[%c0_18, %c0_19, %c0_20] : memref<1x4x256xf32, #tpu.memory_space<vmem>>, vector<1x4x256xf32>
    %41 = vector.shape_cast %40 : vector<1x4x256xf32> to vector<4x256xf32>
    %42 = arith.truncf %41 : vector<4x256xf32> to vector<4x256xbf16>
    %cst_21 = arith.constant dense<0.000000e+00> : vector<4x256xf32>
    %43 = tpu.matmul %39, %42, %cst_21 {dimension_numbers = #tpu.dot_dimension_numbers<[1], [0], [0], [1], [0, 0, 1, 1], [], []>} : vector<4x4xbf16>, vector<4x256xbf16>, vector<4x256xf32> -> vector<4x256xf32>
    %44 = arith.addf %37, %43 : vector<4x256xf32>
    %c0_22 = arith.constant 0 : index
    %c0_23 = arith.constant 0 : index
    %45 = vector.load %arg8[%c0_22, %c0_23] : memref<4x1xf32, #tpu.memory_space<vmem>>, vector<4x1xf32>
    %46 = vector.broadcast %45 : vector<4x1xf32> to vector<4x256xf32>
    %47 = arith.addf %44, %46 : vector<4x256xf32>
    %c0_24 = arith.constant 0 : index
    %c0_25 = arith.constant 0 : index
    %c0_26 = arith.constant 0 : index
    %48 = vector.load %arg9[%c0_24, %c0_25, %c0_26] : memref<1x4x256xf32, #tpu.memory_space<vmem>>, vector<1x4x256xf32>
    %49 = vector.shape_cast %48 : vector<1x4x256xf32> to vector<4x256xf32>
    %50 = vector.shape_cast %47 : vector<4x256xf32> to vector<1x4x256xf32>
    tpu.vector_store %arg9[%c0_24, %c0_25, %c0_26], %50 {strides = array<i32>} : memref<1x4x256xf32, #tpu.memory_space<vmem>>, vector<1x4x256xf32>,
    return
  }
  func.func @transform_0(%arg0: i32) -> (i32, i32, i32) {
    %c0_i32 = arith.constant 0 : i32
    %c0_i32_0 = arith.constant 0 : i32
    %c0_i32_1 = arith.constant 0 : i32
    return %arg0, %c0_i32, %c0_i32_0 : i32, i32, i32
  }
  func.func @transform_1(%arg0: i32) -> (i32, i32) {
    %c0_i32 = arith.constant 0 : i32
    %c0_i32_0 = arith.constant 0 : i32
    %c0_i32_1 = arith.constant 0 : i32
    return %c0_i32, %c0_i32_0 : i32, i32
  }
  func.func @transform_2(%arg0: i32) -> (i32, i32) {
    %c0_i32 = arith.constant 0 : i32
    %c0_i32_0 = arith.constant 0 : i32
    %c0_i32_1 = arith.constant 0 : i32
    return %c0_i32, %c0_i32_0 : i32, i32
  }
  func.func @transform_3(%arg0: i32) -> (i32, i32) {
    %c0_i32 = arith.constant 0 : i32
    %c0_i32_0 = arith.constant 0 : i32
    %c0_i32_1 = arith.constant 0 : i32
    return %c0_i32, %c0_i32_0 : i32, i32
  }
  func.func @transform_4(%arg0: i32) -> (i32, i32) {
    %c0_i32 = arith.constant 0 : i32
    %c0_i32_0 = arith.constant 0 : i32
    %c0_i32_1 = arith.constant 0 : i32
    return %c0_i32, %c0_i32_0 : i32, i32
  }
  func.func @transform_5(%arg0: i32) -> (i32, i32, i32) {
    %c0_i32 = arith.constant 0 : i32
    %c0_i32_0 = arith.constant 0 : i32
    %c0_i32_1 = arith.constant 0 : i32
    return %arg0, %c0_i32, %c0_i32_0 : i32, i32, i32
  }
  func.func @transform_6(%arg0: i32) -> (i32, i32) {
    %c0_i32 = arith.constant 0 : i32
    %c0_i32_0 = arith.constant 0 : i32
    %c0_i32_1 = arith.constant 0 : i32
    return %c0_i32, %c0_i32_0 : i32, i32
  }
  func.func @transform_7(%arg0: i32) -> (i32, i32) {
    %c0_i32 = arith.constant 0 : i32
    %c0_i32_0 = arith.constant 0 : i32
    %c0_i32_1 = arith.constant 0 : i32
    return %c0_i32, %c0_i32_0 : i32, i32
  }
  func.func @transform_8(%arg0: i32) -> (i32, i32, i32) {
    %c0_i32 = arith.constant 0 : i32
    %c0_i32_0 = arith.constant 0 : i32
    %c0_i32_1 = arith.constant 0 : i32
    return %arg0, %c0_i32, %c0_i32_0 : i32, i32, i32
  }
}

</mosaic_0001>

<bundles_post_ra>
// kernel: mid_res_block.4
= control target key start
LH: loop header
LB: loop body
LE: loop exit
PB: predicated region body
PF: predicated region fallthrough
CT: control target
= control target key end

     0   :  { %vm29_vm0 = vcmask 261120   ;;  %vm82_vm1 = vcmask 1043456   ;;  %vm78_vm6 = vcmask 31744   ;;  %vm106_vm7 = vcmask 25600   ;;  %s179_s1 = inlined_call_operand.vmem [shape: f32[32,4], index: 1, kind: input, shape index: {}]   ;;  %s180_s2 = inlined_call_operand.vmem [shape: f32[1,4], index: 2, kind: input, shape index: {}]   ;;  %s181_s0 = inlined_call_operand.vmem [shape: f32[2,32], index: 0, kind: input, shape index: {}]   ;;  %s182_s4 = inlined_call_operand.vmem [shape: f32[1,4], index: 4, kind: input, shape index: {}]   ;;  %s183_s3 = inlined_call_operand.vmem [shape: f32[4,4], index: 3, kind: input, shape index: {}]   ;;  %s184_s5 = inlined_call_operand.vmem [shape: f32[2,4], index: 5, kind: output, shape index: {}]  }
   0x1   :  { %v24_v0 = vld [vmem:[%s179_s1 + $0x18] sm:$0xff]  ;;  %v23_v1 = vld [vmem:[%s179_s1 + $0x10] sm:$0xff]  ;;  %v22_v2 = vld [vmem:[%s179_s1 + $0x8] sm:$0xff] }
   0x2   :  { %45 = vmatpush.msra.mxu0 %v24_v0  ;;  %v21_v3 = vld [vmem:[%s179_s1] sm:$0xff] }
   0x3   :  { %v20_v4 = vld [vmem:[%s181_s0] sm:$0x3] }
   0x4   :  { %46 = vmatpush.msra.mxu0 %v23_v1  ;;  %v116_v5 = vld [vmem:[%s180_s2] ss:$0 sm:$0xff] }
   0x5   :  { %v73_v6 = vld [vmem:[%s183_s3] sm:$0xf] }
   0x6   :  { %47 = vmatpush.msra.mxu0 %v22_v2  ;;  %114 = vmatpush.msk.msra.mxu1 %vm82_vm1, %v73_v6  ;;  %v117_v23 = vld [vmem:[%s182_s4] ss:$0 sm:$0xff] }
   0x8   :  { %48 = vmatpush.msra.mxu0 %v21_v3 }
   0x9   :  { %112 = vmatmul.msk.f32.vlgmr.msra.gmra.mxu0 %vm29_vm0, %v20_v4 }
  0x86   :  { %v50_v7 = vpop.f32.mrf.mxu0 }
  0x87   :  { %v51_v8 = vadd.f32 %v116_v5, %v50_v7 }
  0x89   :  { %v113_v9 = vmul.f32 -1.442695, %v51_v8 }
  0x8b   :  { %118 = vpow2.f32 %v113_v9 }
  0x91   :  { %v119_v10 = vpop.eup %118 }
  0x92   :  { %v56_v11 = vadd.f32 1.0, %v119_v10 }
  0x94   :  { %120 = vrcp.f32 %v56_v11  ;;  %v68_v15 = vand.u32 2147483648, %v56_v11  ;;  %v66_v17 = vand.u32 2147483647, %v56_v11  ;;  %vm62_vm3 = vweird.f32 %v56_v11 }
  0x96   :  { %v69_v19 = vor.u32 1.1754944e-38, %v68_v15  ;;  %vm67_vm5 = vcmp.eq.f32.partialorder %v66_v17, 8.507059e+37 }
  0x9a   :  { %v121_v12 = vpop.eup %120 }
  0x9b   :  { %v58_v13 = vmul.f32 %v121_v12, %v56_v11  ;;  %vm63_vm2 = vweird.f32 %v121_v12 }
  0x9c   :  { %vm64_vm4 = vmor %vm62_vm3, %vm63_vm2 }
  0x9d   :  { %v59_v14 = vsub.f32 1.0, %v58_v13 }
  0x9f   :  { %v60_v16 = vmul.f32 %v121_v12, %v59_v14 }
  0xa1   :  { %v61_v18 = vadd.f32 %v121_v12, %v60_v16 }
  0xa3   :  { %v65_v20 = vsel %vm64_vm4, %v121_v12, %v61_v18 }
  0xa4   :  { %v70_v21 = vsel %vm67_vm5, %v69_v19, %v65_v20 }
  0xa5   :  { %v72_v22 = vmul.f32 %v70_v21, %v51_v8 }
  0xa7   :  { %115 = vmatmul.msk.f32.vlgmr.msra.gmra.mxu1 %vm78_vm6, %v72_v22 }
 0x124   :  { %v103_v24 = vpop.f32.mrf.mxu1 }
 0x125   :  { %v104_v25 = vadd.f32 %v117_v23, %v103_v24 }
 0x127   :  { %107 = vst.msk [vmem:[%s184_s5] sm:$0x3] %vm106_vm7, %v104_v25 }

// kernel: mid_res_block.5
= control target key start
LH: loop header
LB: loop body
LE: loop exit
PB: predicated region body
PF: predicated region fallthrough
CT: control target
= control target key end

     0   :  { %s727_s21 = smov 0   ;;  %s849_s0 = inlined_call_operand.vmem [shape: f32[2,36,256], index: 0, kind: input, shape index: {}]   ;;  %s850_s1 = inlined_call_operand.vmem [shape: f32[36,256], index: 1, kind: input, shape index: {}]   ;;  %s851_s2 = inlined_call_operand.vmem [shape: f32[36,256], index: 2, kind: input, shape index: {}]   ;;  %s852_s3 = inlined_call_operand.vmem [shape: f32[2,36], index: 3, kind: input, shape index: {}]   ;;  %s853_s4 = inlined_call_operand.vmem [shape: f32[2,1], index: 4, kind: input, shape index: {}]   ;;  %s854_s5 = inlined_call_operand.vmem [shape: f32[2,36,1], index: 5, kind: input, shape index: {}]   ;;  %s855_s6 = inlined_call_operand.vmem [shape: f32[2,2,256], index: 6, kind: output, shape index: {}]  }
   0x1 LB: > { %s631_s22 = sadd.s32 4294967295, %s688_s21   ;;  %p635_p0 = scmp.ge.s32.totalorder %s688_s21, 1  ;;  %s688_s21 = sphi %s727_s21, %s16_s21  }
   0x2   : > { %p222_p1 = scmp.lt.s32.totalorder %s688_s21, 3 }
   0x4   : > { %p223_p2 = pnand %p635_p0, %p222_p1 }
   0x5   : > { %p257_p3 = scmp.lt.s32.totalorder (!%p223_p2), %s631_s22, 1 }
   0x6   : > { %226 = sbr.rel (%p223_p2) target bundleno = 796 (0x31c), region = 44 }
   0xb   : > { %v690_v0 = vmov 0   ;;  %s857_s22 = smov (!%p257_p3, %s631_s22), 1  ;;  %v475_v6 = vld [vmem:[%s853_s4] sm:$0x3]  ;;  %vm330_vm0 = vcmask 1043456   ;;  %v691_v43 = vmov 9216.0  }
   0xc   : > { %668 = vset.pattern.permute.xlu1 %v690_v0  ;;  %667 = vset.pattern.permute.xlu0 %v690_v0  ;;  %s648_s23 = smul.u32 40, %s857_s22  ;;  %670 = vrcp.f32 %v691_v43  ;;  %v431_v43 = vld [vmem:[%s850_s1 + $0x20] sm:$0xff]  ;;  %vm485_vm5 = vcmask 1041408   ;;  %vm481_vm6 = vcmask 293888  }
   0xd   : > { %669 = vset.pattern.permute.xlu2 %v690_v0  ;;  %s647_s29 = smul.u32 80, %s857_s22 }
   0xe   : > { %s266_s26 = scalar_lea.vmem %s854_s5, %s648_s23 }
   0xf   : > { %v285_v1 = vld [vmem:[%s266_s26 + $0x10] sm:$0xff]  ;;  %v283_v2 = vld [vmem:[%s266_s26] sm:$0xff]  ;;  %v286_v4 = vld [vmem:[%s266_s26 + $0x18] sm:$0xff]  ;;  %s261_s8 = scalar_lea.vmem %s849_s0, %s647_s29 }
  0x10   : > { %300 = vperm.xlu1 %668, %v285_v1   ;;  %290 = vperm.xlu0 %667, %v283_v2   ;;  %v287_v3 = vld [vmem:[%s266_s26 + $0x20] sm:$0xf]  ;;  %v284_v5 = vld [vmem:[%s266_s26 + $0x8] sm:$0xff]  ;;  %v275_v13 = vld [vmem:[%s261_s8 + $0x10] sm:$0xff] }
  0x11   : > { %310 = vperm.xlu2 %669, %v287_v3   ;;  %v273_v8 = vld [vmem:[%s261_s8] sm:$0xff]  ;;  %v274_v9 = vld [vmem:[%s261_s8 + $0x8] sm:$0xff]  ;;  %v276_v15 = vld [vmem:[%s261_s8 + $0x18] sm:$0xff] }
  0x12   : > { %v277_v18 = vld [vmem:[%s261_s8 + $0x20] sm:$0xff]  ;;  %v278_v21 = vld [vmem:[%s261_s8 + $0x28] sm:$0xff]  ;;  %v279_v27 = vld [vmem:[%s261_s8 + $0x30] sm:$0xff]  ;;  %v671_v44 = vpop.eup %670 }
  0x13   : > { %v281_v25 = vld [vmem:[%s261_s8 + $0x40] sm:$0xf]  ;;  %v280_v30 = vld [vmem:[%s261_s8 + $0x38] sm:$0xff]  ;;  %v282_v34 = vld [vmem:[%s261_s8 + $0x48] sm:$0xf]  ;;  %v345_v45 = vmul.f32 9216.0, %v671_v44  ;;  %vm349_vm1 = vweird.f32 %v671_v44 }
  0x15   : > { %v346_v46 = vsub.f32 1.0, %v345_v45 }
  0x17   : > { %v347_v50 = vmul.f32 %v671_v44, %v346_v46 }
  0x18   : > { %305 = vperm.xlu1 %668, %v286_v4   ;;  %295 = vperm.xlu0 %667, %v284_v5  }
  0x19   : > { %v348_v53 = vadd.f32 %v671_v44, %v347_v50  ;;  %v434_v50 = vld [vmem:[%s850_s1 + $0x38] sm:$0xff] }
  0x1b   : > { %v350_v56 = vsel %vm349_vm1, %v671_v44, %v348_v53 }
  0x20   : > { %478 = vperm.xlu1 %668, %v475_v6  }
  0x6b   : > { %v311_v24 = vpop.permute.xlu2 %310 }
  0x6c   : > { %v321_v31 = vadd.f32 %v311_v24, %v281_v25  ;;  %v322_v37 = vadd.f32 %v311_v24, %v282_v34 }
  0x6e   : > { %v331_v38 = vsel %vm330_vm0, %v321_v31, 0.0  ;;  %v333_v41 = vsel %vm330_vm0, %v322_v37, 0.0 }
  0x82   : > { %v291_v7 = vpop.permute.xlu0 %290  ;;  %v301_v10 = vpop.permute.xlu1 %300 }
  0x83   : > { %v313_v11 = vadd.f32 %v291_v7, %v273_v8  ;;  %v314_v12 = vadd.f32 %v291_v7, %v274_v9  ;;  %v317_v22 = vadd.f32 %v301_v10, %v277_v18  ;;  %v318_v28 = vadd.f32 %v301_v10, %v278_v21 }
  0x85   : > { %v323_v16 = vadd.f32 %v314_v12, %v313_v11 }
  0x8a   : > { %v296_v14 = vpop.permute.xlu0 %295  ;;  %v306_v26 = vpop.permute.xlu1 %305 }
  0x8b   : > { %v315_v17 = vadd.f32 %v296_v14, %v275_v13  ;;  %v316_v19 = vadd.f32 %v296_v14, %v276_v15  ;;  %v319_v32 = vadd.f32 %v306_v26, %v279_v27  ;;  %v320_v35 = vadd.f32 %v306_v26, %v280_v30 }
  0x8d   : > { %v324_v20 = vadd.f32 %v323_v16, %v315_v17 }
  0x8f   : > { %v325_v23 = vadd.f32 %v324_v20, %v316_v19 }
  0x91   : > { %v326_v29 = vadd.f32 %v325_v23, %v317_v22 }
  0x93   : > { %v327_v33 = vadd.f32 %v326_v29, %v318_v28 }
  0x95   : > { %v328_v36 = vadd.f32 %v327_v33, %v319_v32 }
  0x97   : > { %v329_v39 = vadd.f32 %v328_v36, %v320_v35 }
  0x99   : > { %v332_v40 = vadd.f32 %v331_v38, %v329_v39 }
  0x9b   : > { %v334_v42 = vadd.f32 %v333_v41, %v332_v40  ;;  %v435_v41 = vld [vmem:[%s850_s1 + $0x40] sm:$0xf] }
  0x9d   : > { %335 = vadd.xlane.f32.xlu2 %v334_v42  ;;  %v436_v42 = vld [vmem:[%s850_s1 + $0x48] sm:$0xf] }
 0x110   : > { %v336_v47 = vpop.xlane.xlu2 %335 }
 0x111   : > { %v337_v48 = vrot.slane %v336_v47, 4 }
 0x113   : > { %v338_v49 = vadd.f32 %v337_v48, %v336_v47  ;;  %v433_v48 = vld [vmem:[%s850_s1 + $0x30] sm:$0xff] }
 0x115   : > { %v339_v51 = vrot.slane %v338_v49, 2 }
 0x117   : > { %v340_v52 = vadd.f32 %v339_v51, %v338_v49  ;;  %v432_v49 = vld [vmem:[%s850_s1 + $0x28] sm:$0xff]  ;;  %v455_v51 = vld [vmem:[%s851_s2 + $0x40] sm:$0xf] }
 0x119   : > { %v341_v54 = vrot.slane %v340_v52, 1 }
 0x11b   : > { %v342_v55 = vadd.f32 %v341_v54, %v340_v52  ;;  %v456_v52 = vld [vmem:[%s851_s2 + $0x48] sm:$0xf] }
 0x11d   : > { %649 = vpush %v342_v55 }
 0x11e   : > { %651 = vpush %v350_v56 }
 0x14e   : > { %s650_s9 = spop %649 }
 0x14f   : > { %s750_s10 = spop %651 }
 0x150   : > { %s352_s11 = smul.f32 %s750_s10, %s650_s9 }
 0x152   : > { %v353_v57 = vstv %s352_s11 }
 0x153   : > { %v753_v58 = vsub.f32 %v313_v11, %v353_v57  ;;  %v755_v59 = vsub.f32 %v314_v12, %v353_v57  ;;  %v757_v60 = vsub.f32 %v315_v17, %v353_v57  ;;  %v763_v63 = vsub.f32 %v316_v19, %v353_v57 }
 0x154   : > { %v358_v0 = vsub.f32 %v317_v22, %v353_v57  ;;  %v359_v3 = vsub.f32 %v318_v28, %v353_v57  ;;  %v360_v6 = vsub.f32 %v319_v32, %v353_v57  ;;  %v362_v9 = vsub.f32 %v321_v31, %v353_v57 }
 0x155   : > { %v364_v61 = vmul.f32 %v753_v58, %v753_v58  ;;  %v365_v62 = vmul.f32 %v755_v59, %v755_v59  ;;  %v366_v1 = vmul.f32 %v757_v60, %v757_v60  ;;  %v367_v4 = vmul.f32 %v763_v63, %v763_v63 }
 0x156   : > { %v368_v7 = vmul.f32 %v358_v0, %v358_v0  ;;  %v361_v10 = vsub.f32 %v320_v35, %v353_v57  ;;  %v369_v11 = vmul.f32 %v359_v3, %v359_v3  ;;  %v363_v13 = vsub.f32 %v322_v37, %v353_v57 }
 0x157   : > { %v374_v2 = vadd.f32 %v365_v62, %v364_v61  ;;  %v370_v14 = vmul.f32 %v360_v6, %v360_v6  ;;  %v372_v16 = vmul.f32 %v362_v9, %v362_v9 }
 0x158   : > { %v371_v17 = vmul.f32 %v361_v10, %v361_v10  ;;  %v373_v19 = vmul.f32 %v363_v13, %v363_v13 }
 0x159   : > { %v375_v5 = vadd.f32 %v374_v2, %v366_v1  ;;  %v381_v21 = vsel %vm330_vm0, %v372_v16, 0.0  ;;  %v429_v1 = vld [vmem:[%s850_s1 + $0x10] sm:$0xff]  ;;  %v430_v16 = vld [vmem:[%s850_s1 + $0x18] sm:$0xff] }
 0x15a   : > { %v383_v23 = vsel %vm330_vm0, %v373_v19, 0.0 }
 0x15b   : > { %v376_v8 = vadd.f32 %v375_v5, %v367_v4 }
 0x15d   : > { %v377_v12 = vadd.f32 %v376_v8, %v368_v7  ;;  %v452_v7 = vld [vmem:[%s851_s2 + $0x28] sm:$0xff]  ;;  %v454_v8 = vld [vmem:[%s851_s2 + $0x38] sm:$0xff] }
 0x15f   : > { %v378_v15 = vadd.f32 %v377_v12, %v369_v11  ;;  %v428_v11 = vld [vmem:[%s850_s1 + $0x8] sm:$0xff] }
 0x161   : > { %v379_v18 = vadd.f32 %v378_v15, %v370_v14 }
 0x163   : > { %v380_v20 = vadd.f32 %v379_v18, %v371_v17 }
 0x165   : > { %v382_v22 = vadd.f32 %v381_v21, %v380_v20  ;;  %v447_v20 = vld [vmem:[%s851_s2] sm:$0xff]  ;;  %v449_v21 = vld [vmem:[%s851_s2 + $0x10] sm:$0xff] }
 0x167   : > { %v384_v24 = vadd.f32 %v383_v23, %v382_v22 }
 0x169   : > { %385 = vadd.xlane.f32.xlu0 %v384_v24 }
 0x1dc   : > { %v386_v25 = vpop.xlane.xlu0 %385 }
 0x1dd   : > { %v387_v26 = vrot.slane %v386_v25, 4 }
 0x1df   : > { %v388_v27 = vadd.f32 %v387_v26, %v386_v25  ;;  %v448_v25 = vld [vmem:[%s851_s2 + $0x8] sm:$0xff]  ;;  %v450_v26 = vld [vmem:[%s851_s2 + $0x18] sm:$0xff] }
 0x1e1   : > { %v389_v28 = vrot.slane %v388_v27, 2 }
 0x1e3   : > { %v390_v29 = vadd.f32 %v389_v28, %v388_v27 }
 0x1e5   : > { %v391_v30 = vrot.slane %v390_v29, 1 }
 0x1e7   : > { %v392_v31 = vadd.f32 %v391_v30, %v390_v29 }
 0x1e9   : > { %653 = vpush %v392_v31 }
 0x21a   : > { %s654_s12 = spop %653 }
 0x21b   : > { %s402_s13 = smul.f32 %s654_s12, %s750_s10 }
 0x21d   : > { %s403_s14 = sadd.f32 1e-05, %s402_s13 }
 0x21f   : > { %v404_v32 = vstv %s403_s14  ;;  %s646_s14 = sshll.u32 %s857_s22, 2 }
 0x220   : > { %672 = vrsqrt.f32 %v404_v32  ;;  %vm411_vm3 = vweird.f32 %v404_v32  ;;  %s271_s17 = scalar_lea.vmem %s855_s6, %s646_s14 }
 0x226   : > { %v673_v33 = vpop.eup %672 }
 0x227   : > { %v406_v34 = vmul.f32 %v673_v33, %v404_v32  ;;  %vm412_vm2 = vweird.f32 %v673_v33 }
 0x228   : > { %vm413_vm4 = vmor %vm411_vm3, %vm412_vm2 }
 0x229   : > { %v407_v35 = vmul.f32 %v673_v33, %v406_v34 }
 0x22b   : > { %v408_v36 = vmul.f32 0.5, %v407_v35 }
 0x22d   : > { %v409_v37 = vsub.f32 1.5, %v408_v36 }
 0x22f   : > { %v410_v38 = vmul.f32 %v673_v33, %v409_v37  ;;  %v479_v37 = vpop.permute.xlu1 %478 }
 0x231   : > { %v414_v39 = vsel %vm413_vm4, %v673_v33, %v410_v38  ;;  %v467_v33 = vld [vmem:[%s852_s3] sm:$0x3] }
 0x232   : > { %655 = vpush %v414_v39  ;;  %v468_v36 = vpack.c.bf16 %v467_v33, %v467_v33 }
 0x263   : > { %s656_s15 = spop %655 }
 0x264   : > { %v416_v40 = vstv %s656_s15 }
 0x265   : > { %v425_v44 = vmul.f32 %v416_v40, %v362_v9  ;;  %v426_v45 = vmul.f32 %v416_v40, %v363_v13  ;;  %v421_v46 = vmul.f32 %v416_v40, %v358_v0  ;;  %v423_v47 = vmul.f32 %v416_v40, %v360_v6  ;;  %v427_v0 = vld [vmem:[%s850_s1] sm:$0xff]  ;;  %v453_v6 = vld [vmem:[%s851_s2 + $0x30] sm:$0xff] }
 0x266   : > { %v422_v53 = vmul.f32 %v416_v40, %v359_v3  ;;  %v424_v54 = vmul.f32 %v416_v40, %v361_v10  ;;  %v417_v55 = vmul.f32 %v416_v40, %v753_v58  ;;  %v419_v56 = vmul.f32 %v416_v40, %v757_v60  ;;  %v451_v3 = vld [vmem:[%s851_s2 + $0x20] sm:$0xff] }
 0x267   : > { %v445_v57 = vmul.f32 %v435_v41, %v425_v44  ;;  %v446_v61 = vmul.f32 %v436_v42, %v426_v45  ;;  %v441_v62 = vmul.f32 %v431_v43, %v421_v46  ;;  %v443_v2 = vmul.f32 %v433_v48, %v423_v47 }
 0x268   : > { %v442_v4 = vmul.f32 %v432_v49, %v422_v53  ;;  %v444_v58 = vmul.f32 %v434_v50, %v424_v54  ;;  %v437_v9 = vmul.f32 %v427_v0, %v417_v55  ;;  %v439_v10 = vmul.f32 %v429_v1, %v419_v56 }
 0x269   : > { %v465_v5 = vadd.f32 %v455_v51, %v445_v57  ;;  %v466_v60 = vadd.f32 %v456_v52, %v446_v61  ;;  %v461_v14 = vadd.f32 %v451_v3, %v441_v62  ;;  %v418_v15 = vmul.f32 %v416_v40, %v755_v59 }
 0x26a   : > { %v463_v17 = vadd.f32 %v453_v6, %v443_v2  ;;  %v462_v18 = vadd.f32 %v452_v7, %v442_v4  ;;  %v464_v19 = vadd.f32 %v454_v8, %v444_v58  ;;  %v420_v22 = vmul.f32 %v416_v40, %v763_v63 }
 0x26b   : > { %v473_v12 = vpack.c.bf16 %v465_v5, %v465_v5  ;;  %v474_v13 = vpack.c.bf16 %v466_v60, %v466_v60  ;;  %v438_v24 = vmul.f32 %v428_v11, %v418_v15  ;;  %v457_v28 = vadd.f32 %v447_v20, %v437_v9 }
 0x26c   : > { %v440_v27 = vmul.f32 %v430_v16, %v420_v22  ;;  %v459_v29 = vadd.f32 %v449_v21, %v439_v10  ;;  %v471_v30 = vpack.c.bf16 %v463_v17, %v461_v14  ;;  %v472_v63 = vpack.c.bf16 %v464_v19, %v462_v18 }
 0x26d   : > { %v487_v23 = vsel %vm485_vm5, %v473_v12, 0  ;;  %v490_v59 = vsel %vm485_vm5, %v474_v13, 0  ;;  %v458_v31 = vadd.f32 %v448_v25, %v438_v24 }
 0x26e   : > { %497 = vmatpush.bf16.msra.mxu0 %v487_v23  ;;  %510 = vmatpush.bf16.msra.mxu1 %v490_v59  ;;  %v460_v32 = vadd.f32 %v450_v26, %v440_v27  ;;  %v469_v34 = vpack.c.bf16 %v459_v29, %v457_v28 }
 0x270   : > { %v470_v35 = vpack.c.bf16 %v460_v32, %v458_v31 }
 0x272   : > { %498 = vmatpush.bf16.msra.mxu0 %v471_v30  ;;  %511 = vmatpush.bf16.msra.mxu1 %v472_v63 }
 0x276   : > { %499 = vmatpush.bf16.msra.mxu0 %v469_v34  ;;  %512 = vmatpush.bf16.msra.mxu1 %v470_v35 }
 0x279   : > { %640 = vmatmul.msk.bf16.vlgmr.msra.gmra.mxu0 %vm481_vm6, %v468_v36  ;;  %641 = vmatmul.msk.bf16.vlgmr.msra.gmra.mxu1 %vm481_vm6, %v468_v36 }
 0x2f6   : > { %v501_v38 = vpop.f32.mrf.mxu0  ;;  %v514_v39 = vpop.f32.mrf.mxu1 }
 0x2f7   : > { %v502_v40 = vadd.f32 %v501_v38, %v479_v37  ;;  %v515_v41 = vadd.f32 %v514_v39, %v479_v37 }
 0x2f9   : > { %v642_v42 = vmul.f32 -1.442695, %v502_v40  ;;  %v643_v43 = vmul.f32 -1.442695, %v515_v41 }
 0x2fb   : > { %674 = vpow2.f32 %v642_v42 }
 0x2fc   : > { %676 = vpow2.f32 %v643_v43 }
 0x2fe   : > { %v503_v44 = vpop.f32.mrf.mxu0  ;;  %v516_v45 = vpop.f32.mrf.mxu1 }
 0x301   : > { %v675_v46 = vpop.eup %674 }
 0x302   : > { %v677_v47 = vpop.eup %676  ;;  %v524_v48 = vadd.f32 1.0, %v675_v46 }
 0x303   : > { %v525_v49 = vadd.f32 1.0, %v677_v47 }
 0x304   : > { %678 = vrcp.f32 %v524_v48  ;;  %v537_v57 = vand.u32 2147483648, %v524_v48  ;;  %v535_v62 = vand.u32 2147483647, %v524_v48  ;;  %vm531_vm9 = vweird.f32 %v524_v48 }
 0x305   : > { %680 = vrcp.f32 %v525_v49  ;;  %v552_v61 = vand.u32 2147483648, %v525_v49  ;;  %v550_v1 = vand.u32 2147483647, %v525_v49  ;;  %vm546_vm11 = vweird.f32 %v525_v49 }
 0x306   : > { %v538_v58 = vor.u32 1.1754944e-38, %v537_v57  ;;  %vm536_vm13 = vcmp.eq.f32.partialorder %v535_v62, 8.507059e+37 }
 0x307   : > { %v553_v5 = vor.u32 1.1754944e-38, %v552_v61  ;;  %vm551_vm14 = vcmp.eq.f32.partialorder %v550_v1, 8.507059e+37 }
 0x30a   : > { %v679_v50 = vpop.eup %678 }
 0x30b   : > { %v681_v51 = vpop.eup %680  ;;  %v527_v52 = vmul.f32 %v679_v50, %v524_v48  ;;  %vm532_vm7 = vweird.f32 %v679_v50 }
 0x30c   : > { %v542_v53 = vmul.f32 %v681_v51, %v525_v49  ;;  %vm547_vm8 = vweird.f32 %v681_v51  ;;  %vm533_vm10 = vmor %vm531_vm9, %vm532_vm7 }
 0x30d   : > { %v528_v54 = vsub.f32 1.0, %v527_v52  ;;  %vm548_vm12 = vmor %vm546_vm11, %vm547_vm8 }
 0x30e   : > { %v543_v55 = vsub.f32 1.0, %v542_v53 }
 0x30f   : > { %v529_v56 = vmul.f32 %v679_v50, %v528_v54 }
 0x310   : > { %v544_v0 = vmul.f32 %v681_v51, %v543_v55 }
 0x311   : > { %v530_v2 = vadd.f32 %v679_v50, %v529_v56 }
 0x312   : > { %v545_v3 = vadd.f32 %v681_v51, %v544_v0 }
 0x313   : > { %v534_v4 = vsel %vm533_vm10, %v679_v50, %v530_v2 }
 0x314   : > { %v549_v60 = vsel %vm548_vm12, %v681_v51, %v545_v3  ;;  %v539_v6 = vsel %vm536_vm13, %v538_v58, %v534_v4 }
 0x315   : > { %v554_v7 = vsel %vm551_vm14, %v553_v5, %v549_v60  ;;  %v556_v9 = vmul.f32 %v539_v6, %v502_v40 }
 0x316   : > { %v557_v8 = vmul.f32 %v554_v7, %v515_v41 }
 0x318   : > { %v560_v10 = vrot.slane %v557_v8, 6 }
 0x31a   : > { %v561_v11 = vsel %vm485_vm5, %v556_v9, %v560_v10 }
 0x31b   : > { %563 = vst [vmem:[%s271_s17] sm:$0xf] %v561_v11 }
 0x31c PF: > { %s16_s21 = sadd.s32 1, %s688_s21  }
 0x31d   : > { %p13_p4 = scmp.ge.s32.totalorder %s16_s21, 4  }
 0x31f   :  { %15 = sbr.rel (!%p13_p4) target bundleno = 1 (0x1), region = 77 }

// kernel: mid_res_block.6
= control target key start
LH: loop header
LB: loop body
LE: loop exit
PB: predicated region body
PF: predicated region fallthrough
CT: control target
= control target key end

     0   :  { %s578_s18 = smov 0   ;;  %s650_s0 = inlined_call_operand.vmem [shape: f32[2,18,256], index: 0, kind: input, shape index: {}]   ;;  %s651_s1 = inlined_call_operand.vmem [shape: f32[18,256], index: 1, kind: input, shape index: {}]   ;;  %s652_s2 = inlined_call_operand.vmem [shape: f32[18,256], index: 2, kind: input, shape index: {}]   ;;  %s653_s3 = inlined_call_operand.vmem [shape: f32[2,18], index: 3, kind: input, shape index: {}]   ;;  %s654_s4 = inlined_call_operand.vmem [shape: f32[2,1], index: 4, kind: input, shape index: {}]   ;;  %s655_s5 = inlined_call_operand.vmem [shape: f32[2,2,256], index: 5, kind: output, shape index: {}]  }
   0x1 LB: > { %s490_s19 = sadd.s32 4294967295, %s544_s18   ;;  %p494_p0 = scmp.ge.s32.totalorder %s544_s18, 1  ;;  %s544_s18 = sphi %s578_s18, %s15_s18  }
   0x2   : > { %p187_p1 = scmp.lt.s32.totalorder %s544_s18, 3 }
   0x4   : > { %p188_p2 = pnand %p494_p0, %p187_p1 }
   0x5   : > { %p215_p3 = scmp.lt.s32.totalorder (!%p188_p2), %s490_s19, 1 }
   0x6   : > { %191 = sbr.rel (%p188_p2) target bundleno = 653 (0x28d), region = 40 }
   0xb   : > { %s657_s19 = smov (!%p215_p3, %s490_s19), 1  ;;  %vm235_vm0 = vcmask 1041408   ;;  %v546_v13 = vmov 4608.0   ;;  %v346_v62 = vld [vmem:[%s654_s4] sm:$0x3]  ;;  %v547_v63 = vmov 0  }
   0xc   : > { %s505_s20 = smul.u32 48, %s657_s19  ;;  %526 = vrcp.f32 %v546_v13  ;;  %524 = vset.pattern.permute.xlu1 %v547_v63  ;;  %525 = vset.pattern.permute.xlu0 %v547_v63  ;;  %vm356_vm5 = vcmask 1040384   ;;  %vm352_vm6 = vcmask 146432   ;;  %s504_s11 = sshll.u32 %s657_s19, 2 }
   0xd   : > { %349 = vperm.xlu1 %524, %v346_v62   ;;  %s224_s14 = scalar_lea.vmem %s655_s5, %s504_s11 }
   0xe   : > { %s219_s23 = scalar_lea.vmem %s650_s0, %s505_s20 }
   0xf   : > { %v226_v0 = vld [vmem:[%s219_s23] sm:$0xff]  ;;  %v227_v1 = vld [vmem:[%s219_s23 + $0x8] sm:$0xff]  ;;  %v228_v2 = vld [vmem:[%s219_s23 + $0x10] sm:$0xff] }
  0x10   : > { %v230_v3 = vld [vmem:[%s219_s23 + $0x20] sm:$0x3]  ;;  %v232_v4 = vadd.f32 %v227_v1, %v226_v0  ;;  %v229_v5 = vld [vmem:[%s219_s23 + $0x18] sm:$0xff]  ;;  %v231_v6 = vld [vmem:[%s219_s23 + $0x28] sm:$0x3] }
  0x11   : > { %v236_v8 = vsel %vm235_vm0, %v230_v3, 0.0  ;;  %v238_v10 = vsel %vm235_vm0, %v231_v6, 0.0 }
  0x12   : > { %v233_v7 = vadd.f32 %v232_v4, %v228_v2  ;;  %v527_v14 = vpop.eup %526 }
  0x13   : > { %v250_v15 = vmul.f32 4608.0, %v527_v14  ;;  %vm254_vm1 = vweird.f32 %v527_v14 }
  0x14   : > { %v234_v9 = vadd.f32 %v233_v7, %v229_v5 }
  0x15   : > { %v251_v16 = vsub.f32 1.0, %v250_v15 }
  0x16   : > { %v237_v11 = vadd.f32 %v236_v8, %v234_v9  ;;  %v318_v8 = vld [vmem:[%s651_s1 + $0x10] sm:$0xff]  ;;  %v317_v9 = vld [vmem:[%s651_s1 + $0x8] sm:$0xff] }
  0x17   : > { %v252_v20 = vmul.f32 %v527_v14, %v251_v16 }
  0x18   : > { %v239_v12 = vadd.f32 %v238_v10, %v237_v11  ;;  %v319_v10 = vld [vmem:[%s651_s1 + $0x18] sm:$0xff]  ;;  %v332_v11 = vld [vmem:[%s652_s2 + $0x20] sm:$0x3] }
  0x19   : > { %v253_v23 = vadd.f32 %v527_v14, %v252_v20 }
  0x1a   : > { %240 = vadd.xlane.f32.xlu0 %v239_v12  ;;  %v333_v12 = vld [vmem:[%s652_s2 + $0x28] sm:$0x3] }
  0x1b   : > { %v255_v26 = vsel %vm254_vm1, %v527_v14, %v253_v23 }
  0x8d   : > { %v241_v17 = vpop.xlane.xlu0 %240 }
  0x8e   : > { %v242_v18 = vrot.slane %v241_v17, 4 }
  0x90   : > { %v243_v19 = vadd.f32 %v242_v18, %v241_v17 }
  0x92   : > { %v244_v21 = vrot.slane %v243_v19, 2 }
  0x94   : > { %v245_v22 = vadd.f32 %v244_v21, %v243_v19  ;;  %v328_v19 = vld [vmem:[%s652_s2] sm:$0xff] }
  0x96   : > { %v246_v24 = vrot.slane %v245_v22, 1 }
  0x98   : > { %v247_v25 = vadd.f32 %v246_v24, %v245_v22  ;;  %v330_v24 = vld [vmem:[%s652_s2 + $0x10] sm:$0xff] }
  0x9a   : > { %506 = vpush %v247_v25  ;;  %v329_v25 = vld [vmem:[%s652_s2 + $0x8] sm:$0xff] }
  0x9b   : > { %508 = vpush %v255_v26  ;;  %v331_v26 = vld [vmem:[%s652_s2 + $0x18] sm:$0xff] }
  0xcb   : > { %s507_s24 = spop %506 }
  0xcc   : > { %s594_s25 = spop %508 }
  0xcd   : > { %s257_s26 = smul.f32 %s594_s25, %s507_s24 }
  0xcf   : > { %v258_v27 = vstv %s257_s26 }
  0xd0   : > { %v259_v28 = vsub.f32 %v226_v0, %v258_v27  ;;  %v260_v29 = vsub.f32 %v227_v1, %v258_v27  ;;  %v261_v30 = vsub.f32 %v228_v2, %v258_v27  ;;  %v263_v31 = vsub.f32 %v230_v3, %v258_v27  ;;  %v320_v1 = vld [vmem:[%s651_s1 + $0x20] sm:$0x3]  ;;  %v321_v2 = vld [vmem:[%s651_s1 + $0x28] sm:$0x3] }
  0xd1   : > { %v262_v32 = vsub.f32 %v229_v5, %v258_v27  ;;  %v264_v35 = vsub.f32 %v231_v6, %v258_v27  ;;  %v316_v3 = vld [vmem:[%s651_s1] sm:$0xff] }
  0xd2   : > { %v265_v33 = vmul.f32 %v259_v28, %v259_v28  ;;  %v266_v34 = vmul.f32 %v260_v29, %v260_v29  ;;  %v267_v36 = vmul.f32 %v261_v30, %v261_v30  ;;  %v269_v38 = vmul.f32 %v263_v31, %v263_v31 }
  0xd3   : > { %v268_v39 = vmul.f32 %v262_v32, %v262_v32  ;;  %v270_v41 = vmul.f32 %v264_v35, %v264_v35 }
  0xd4   : > { %v271_v37 = vadd.f32 %v266_v34, %v265_v33  ;;  %v274_v43 = vsel %vm235_vm0, %v269_v38, 0.0 }
  0xd5   : > { %v276_v45 = vsel %vm235_vm0, %v270_v41, 0.0 }
  0xd6   : > { %v272_v40 = vadd.f32 %v271_v37, %v267_v36 }
  0xd8   : > { %v273_v42 = vadd.f32 %v272_v40, %v268_v39  ;;  %v350_v39 = vpop.permute.xlu1 %349 }
  0xda   : > { %v275_v44 = vadd.f32 %v274_v43, %v273_v42 }
  0xdc   : > { %v277_v46 = vadd.f32 %v276_v45, %v275_v44 }
  0xde   : > { %278 = vadd.xlane.f32.xlu0 %v277_v46 }
 0x151   : > { %v279_v47 = vpop.xlane.xlu0 %278 }
 0x152   : > { %v280_v48 = vrot.slane %v279_v47, 4 }
 0x154   : > { %v281_v49 = vadd.f32 %v280_v48, %v279_v47 }
 0x156   : > { %v282_v50 = vrot.slane %v281_v49, 2 }
 0x158   : > { %v283_v51 = vadd.f32 %v282_v50, %v281_v49 }
 0x15a   : > { %v284_v52 = vrot.slane %v283_v51, 1 }
 0x15c   : > { %v285_v53 = vadd.f32 %v284_v52, %v283_v51 }
 0x15e   : > { %510 = vpush %v285_v53 }
 0x18f   : > { %s511_s27 = spop %510 }
 0x190   : > { %s295_s28 = smul.f32 %s511_s27, %s594_s25 }
 0x192   : > { %s296_s29 = sadd.f32 1e-05, %s295_s28 }
 0x194   : > { %v297_v54 = vstv %s296_s29 }
 0x195   : > { %528 = vrsqrt.f32 %v297_v54  ;;  %vm304_vm3 = vweird.f32 %v297_v54 }
 0x19b   : > { %v529_v55 = vpop.eup %528 }
 0x19c   : > { %v299_v56 = vmul.f32 %v529_v55, %v297_v54  ;;  %vm305_vm2 = vweird.f32 %v529_v55 }
 0x19d   : > { %vm306_vm4 = vmor %vm304_vm3, %vm305_vm2 }
 0x19e   : > { %v300_v57 = vmul.f32 %v529_v55, %v299_v56 }
 0x1a0   : > { %v301_v58 = vmul.f32 0.5, %v300_v57 }
 0x1a2   : > { %v302_v59 = vsub.f32 1.5, %v301_v58 }
 0x1a4   : > { %v303_v60 = vmul.f32 %v529_v55, %v302_v59 }
 0x1a6   : > { %v307_v61 = vsel %vm306_vm4, %v529_v55, %v303_v60 }
 0x1a7   : > { %512 = vpush %v307_v61 }
 0x1d8   : > { %s513_s7 = spop %512 }
 0x1d9   : > { %v309_v0 = vstv %s513_s7 }
 0x1da   : > { %v314_v4 = vmul.f32 %v309_v0, %v263_v31  ;;  %v315_v5 = vmul.f32 %v309_v0, %v264_v35  ;;  %v310_v6 = vmul.f32 %v309_v0, %v259_v28  ;;  %v312_v7 = vmul.f32 %v309_v0, %v261_v30  ;;  %v340_v35 = vld [vmem:[%s653_s3] sm:$0x3] }
 0x1db   : > { %v311_v13 = vmul.f32 %v309_v0, %v260_v29  ;;  %v313_v14 = vmul.f32 %v309_v0, %v262_v32  ;;  %v341_v38 = vpack.c.bf16 %v340_v35, %v340_v35 }
 0x1dc   : > { %v326_v15 = vmul.f32 %v320_v1, %v314_v4  ;;  %v327_v16 = vmul.f32 %v321_v2, %v315_v5  ;;  %v322_v17 = vmul.f32 %v316_v3, %v310_v6  ;;  %v324_v18 = vmul.f32 %v318_v8, %v312_v7 }
 0x1dd   : > { %v323_v20 = vmul.f32 %v317_v9, %v311_v13  ;;  %v325_v21 = vmul.f32 %v319_v10, %v313_v14 }
 0x1de   : > { %v338_v22 = vadd.f32 %v332_v11, %v326_v15  ;;  %v339_v23 = vadd.f32 %v333_v12, %v327_v16  ;;  %v334_v29 = vadd.f32 %v328_v19, %v322_v17  ;;  %v336_v30 = vadd.f32 %v330_v24, %v324_v18 }
 0x1df   : > { %v335_v31 = vadd.f32 %v329_v25, %v323_v20  ;;  %v337_v32 = vadd.f32 %v331_v26, %v325_v21 }
 0x1e0   : > { %v344_v27 = vpack.c.bf16 %v338_v22, %v338_v22  ;;  %v345_v28 = vpack.c.bf16 %v339_v23, %v339_v23  ;;  %v342_v36 = vpack.c.bf16 %v336_v30, %v334_v29 }
 0x1e1   : > { %v343_v37 = vpack.c.bf16 %v337_v32, %v335_v31 }
 0x1e2   : > { %v358_v33 = vsel %vm356_vm5, %v344_v27, 0  ;;  %v361_v34 = vsel %vm356_vm5, %v345_v28, 0 }
 0x1e3   : > { %369 = vmatpush.bf16.msra.mxu0 %v358_v33  ;;  %382 = vmatpush.bf16.msra.mxu1 %v361_v34 }
 0x1e7   : > { %370 = vmatpush.bf16.msra.mxu0 %v342_v36  ;;  %383 = vmatpush.bf16.msra.mxu1 %v343_v37 }
 0x1ea   : > { %498 = vmatmul.msk.bf16.vlgmr.msra.gmra.mxu0 %vm352_vm6, %v341_v38  ;;  %499 = vmatmul.msk.bf16.vlgmr.msra.gmra.mxu1 %vm352_vm6, %v341_v38 }
 0x267   : > { %v372_v40 = vpop.f32.mrf.mxu0  ;;  %v385_v41 = vpop.f32.mrf.mxu1 }
 0x268   : > { %v373_v42 = vadd.f32 %v372_v40, %v350_v39  ;;  %v386_v43 = vadd.f32 %v385_v41, %v350_v39 }
 0x26a   : > { %v500_v44 = vmul.f32 -1.442695, %v373_v42  ;;  %v501_v45 = vmul.f32 -1.442695, %v386_v43 }
 0x26c   : > { %530 = vpow2.f32 %v500_v44 }
 0x26d   : > { %532 = vpow2.f32 %v501_v45 }
 0x26f   : > { %v374_v46 = vpop.f32.mrf.mxu0  ;;  %v387_v47 = vpop.f32.mrf.mxu1 }
 0x272   : > { %v531_v48 = vpop.eup %530 }
 0x273   : > { %v533_v49 = vpop.eup %532  ;;  %v395_v50 = vadd.f32 1.0, %v531_v48 }
 0x274   : > { %v396_v51 = vadd.f32 1.0, %v533_v49 }
 0x275   : > { %534 = vrcp.f32 %v395_v50  ;;  %v408_v59 = vand.u32 2147483648, %v395_v50  ;;  %v406_v61 = vand.u32 2147483647, %v395_v50  ;;  %vm402_vm9 = vweird.f32 %v395_v50 }
 0x276   : > { %536 = vrcp.f32 %v396_v51  ;;  %v423_v60 = vand.u32 2147483648, %v396_v51  ;;  %v421_v63 = vand.u32 2147483647, %v396_v51  ;;  %vm417_vm11 = vweird.f32 %v396_v51 }
 0x277   : > { %v409_v3 = vor.u32 1.1754944e-38, %v408_v59  ;;  %vm407_vm13 = vcmp.eq.f32.partialorder %v406_v61, 8.507059e+37 }
 0x278   : > { %v424_v4 = vor.u32 1.1754944e-38, %v423_v60  ;;  %vm422_vm14 = vcmp.eq.f32.partialorder %v421_v63, 8.507059e+37 }
 0x27b   : > { %v535_v52 = vpop.eup %534 }
 0x27c   : > { %v537_v53 = vpop.eup %536  ;;  %v398_v54 = vmul.f32 %v535_v52, %v395_v50  ;;  %vm403_vm7 = vweird.f32 %v535_v52 }
 0x27d   : > { %v413_v55 = vmul.f32 %v537_v53, %v396_v51  ;;  %vm418_vm8 = vweird.f32 %v537_v53  ;;  %vm404_vm10 = vmor %vm402_vm9, %vm403_vm7 }
 0x27e   : > { %v399_v56 = vsub.f32 1.0, %v398_v54  ;;  %vm419_vm12 = vmor %vm417_vm11, %vm418_vm8 }
 0x27f   : > { %v414_v57 = vsub.f32 1.0, %v413_v55 }
 0x280   : > { %v400_v58 = vmul.f32 %v535_v52, %v399_v56 }
 0x281   : > { %v415_v62 = vmul.f32 %v537_v53, %v414_v57 }
 0x282   : > { %v401_v0 = vadd.f32 %v535_v52, %v400_v58 }
 0x283   : > { %v416_v1 = vadd.f32 %v537_v53, %v415_v62 }
 0x284   : > { %v405_v2 = vsel %vm404_vm10, %v535_v52, %v401_v0 }
 0x285   : > { %v420_v5 = vsel %vm419_vm12, %v537_v53, %v416_v1  ;;  %v410_v6 = vsel %vm407_vm13, %v409_v3, %v405_v2 }
 0x286   : > { %v425_v7 = vsel %vm422_vm14, %v424_v4, %v420_v5  ;;  %v427_v9 = vmul.f32 %v410_v6, %v373_v42 }
 0x287   : > { %v428_v8 = vmul.f32 %v425_v7, %v386_v43 }
 0x289   : > { %v431_v10 = vrot.slane %v428_v8, 6 }
 0x28b   : > { %v432_v11 = vsel %vm235_vm0, %v427_v9, %v431_v10 }
 0x28c   : > { %434 = vst [vmem:[%s224_s14] sm:$0xf] %v432_v11 }
 0x28d PF: > { %s15_s18 = sadd.s32 1, %s544_s18  }
 0x28e   : > { %p12_p4 = scmp.ge.s32.totalorder %s15_s18, 4  }
 0x290   :  { %14 = sbr.rel (!%p12_p4) target bundleno = 1 (0x1), region = 70 }

// kernel: mid_res_block.7
= control target key start
LH: loop header
LB: loop body
LE: loop exit
PB: predicated region body
PF: predicated region fallthrough
CT: control target
= control target key end

     0   :  { %s769_s27 = smov 0   ;;  %s885_s0 = inlined_call_operand.vmem [shape: f32[2,18,256], index: 0, kind: input, shape index: {}]   ;;  %s886_s1 = inlined_call_operand.vmem [shape: f32[18,256], index: 1, kind: input, shape index: {}]   ;;  %s887_s2 = inlined_call_operand.vmem [shape: f32[18,256], index: 2, kind: input, shape index: {}]   ;;  %s888_s3 = inlined_call_operand.vmem [shape: f32[4,18], index: 3, kind: input, shape index: {}]   ;;  %s889_s4 = inlined_call_operand.vmem [shape: f32[4,1], index: 4, kind: input, shape index: {}]   ;;  %s890_s5 = inlined_call_operand.vmem [shape: f32[2,4,256], index: 5, kind: input, shape index: {}]   ;;  %s891_s6 = inlined_call_operand.vmem [shape: f32[4,4], index: 6, kind: input, shape index: {}]   ;;  %s892_s7 = inlined_call_operand.vmem [shape: f32[4,1], index: 7, kind: input, shape index: {}]   ;;  %s893_s8 = inlined_call_operand.vmem [shape: f32[2,4,256], index: 8, kind: output, shape index: {}]  }
   0x1 LB: > { %s661_s28 = sadd.s32 4294967295, %s720_s27   ;;  %p665_p0 = scmp.ge.s32.totalorder %s720_s27, 1  ;;  %s720_s27 = sphi %s769_s27, %s18_s27  }
   0x2   : > { %p272_p1 = scmp.lt.s32.totalorder %s720_s27, 3 }
   0x4   : > { %p273_p2 = pnand %p665_p0, %p272_p1 }
   0x5   : > { %p311_p3 = scmp.lt.s32.totalorder (!%p273_p2), %s661_s28, 1 }
   0x6   : > { %276 = sbr.rel (%p273_p2) target bundleno = 657 (0x291), region = 52 }
   0xb   : > { %s895_s28 = smov (!%p311_p3, %s661_s28), 1  ;;  %vm336_vm0 = vcmask 1041408   ;;  %v722_v14 = vmov 4608.0   ;;  %v447_v63 = vld [vmem:[%s889_s4] sm:$0xf]  ;;  %vm541_vm5 = vcmask 31744  }
   0xc   : > { %s681_s29 = smul.u32 48, %s895_s28  ;;  %s679_s30 = sshll.u32 %s895_s28, 3  ;;  %702 = vrcp.f32 %v722_v14  ;;  %vm457_vm6 = vcmask 1040384   ;;  %vm453_vm7 = vcmask 146432  }
   0xd   : > { %s320_s11 = scalar_lea.vmem %s890_s5, %s679_s30 }
   0xe   : > { %s315_s14 = scalar_lea.vmem %s885_s0, %s681_s29  ;;  %v532_v0 = vld [vmem:[%s320_s11] sm:$0xff] }
   0xf   : > { %v327_v1 = vld [vmem:[%s315_s14] sm:$0xff]  ;;  %v328_v2 = vld [vmem:[%s315_s14 + $0x8] sm:$0xff]  ;;  %v329_v3 = vld [vmem:[%s315_s14 + $0x10] sm:$0xff]  ;;  %534 = vst [vmem:[#allocation1] ss:$2 sm:$0xff] %v532_v0  ;;  %v723_v0 = vmov 0  }
  0x10   : > { %v331_v4 = vld [vmem:[%s315_s14 + $0x20] sm:$0x3]  ;;  %v333_v5 = vadd.f32 %v328_v2, %v327_v1  ;;  %v330_v6 = vld [vmem:[%s315_s14 + $0x18] sm:$0xff]  ;;  %v332_v7 = vld [vmem:[%s315_s14 + $0x28] sm:$0x3]  ;;  %700 = vset.pattern.permute.xlu1 %v723_v0  ;;  %701 = vset.pattern.permute.xlu0 %v723_v0 }
  0x11   : > { %v337_v9 = vsel %vm336_vm0, %v331_v4, 0.0  ;;  %v339_v11 = vsel %vm336_vm0, %v332_v7, 0.0  ;;  %450 = vperm.xlu1 %700, %v447_v63  }
  0x12   : > { %v334_v8 = vadd.f32 %v333_v5, %v329_v3  ;;  %v703_v15 = vpop.eup %702  ;;  %v530_v5 = vld [vmem:[%s891_s6] sm:$0xf] }
  0x13   : > { %v351_v16 = vmul.f32 4608.0, %v703_v15  ;;  %vm355_vm1 = vweird.f32 %v703_v15 }
  0x14   : > { %v335_v10 = vadd.f32 %v334_v8, %v330_v6  ;;  %v531_v8 = vpack.c.bf16 %v530_v5, %v530_v5 }
  0x15   : > { %v352_v17 = vsub.f32 1.0, %v351_v16 }
  0x16   : > { %v338_v12 = vadd.f32 %v337_v9, %v335_v10  ;;  %v579_v9 = vld [vmem:[%s892_s7] sm:$0xf] }
  0x17   : > { %v353_v21 = vmul.f32 %v703_v15, %v352_v17 }
  0x18   : > { %v340_v13 = vadd.f32 %v339_v11, %v338_v12  ;;  %v421_v11 = vld [vmem:[%s886_s1 + $0x20] sm:$0x3]  ;;  %v422_v12 = vld [vmem:[%s886_s1 + $0x28] sm:$0x3] }
  0x19   : > { %v354_v24 = vadd.f32 %v703_v15, %v353_v21  ;;  %582 = vperm.xlu1 %700, %v579_v9   ;;  %v433_v21 = vld [vmem:[%s887_s2 + $0x20] sm:$0x3] }
  0x1a   : > { %341 = vadd.xlane.f32.xlu0 %v340_v13  ;;  %v417_v13 = vld [vmem:[%s886_s1] sm:$0xff] }
  0x1b   : > { %v356_v27 = vsel %vm355_vm1, %v703_v15, %v354_v24 }
  0x8d   : > { %v342_v18 = vpop.xlane.xlu0 %341 }
  0x8e   : > { %v343_v19 = vrot.slane %v342_v18, 4 }
  0x90   : > { %v344_v20 = vadd.f32 %v343_v19, %v342_v18  ;;  %v419_v18 = vld [vmem:[%s886_s1 + $0x10] sm:$0xff]  ;;  %v418_v19 = vld [vmem:[%s886_s1 + $0x8] sm:$0xff] }
  0x92   : > { %v345_v22 = vrot.slane %v344_v20, 2 }
  0x94   : > { %v346_v23 = vadd.f32 %v345_v22, %v344_v20  ;;  %v420_v20 = vld [vmem:[%s886_s1 + $0x18] sm:$0xff]  ;;  %v434_v22 = vld [vmem:[%s887_s2 + $0x28] sm:$0x3] }
  0x96   : > { %v347_v25 = vrot.slane %v346_v23, 1 }
  0x98   : > { %v348_v26 = vadd.f32 %v347_v25, %v346_v23 }
  0x9a   : > { %682 = vpush %v348_v26 }
  0x9b   : > { %684 = vpush %v356_v27 }
  0xcb   : > { %s683_s15 = spop %682 }
  0xcc   : > { %s791_s16 = spop %684 }
  0xcd   : > { %s358_s17 = smul.f32 %s791_s16, %s683_s15 }
  0xcf   : > { %v359_v28 = vstv %s358_s17 }
  0xd0   : > { %v794_v29 = vsub.f32 %v327_v1, %v359_v28  ;;  %v796_v30 = vsub.f32 %v328_v2, %v359_v28  ;;  %v798_v31 = vsub.f32 %v329_v3, %v359_v28  ;;  %v800_v32 = vsub.f32 %v331_v4, %v359_v28  ;;  %v535_v1 = vld.sshfl [vmem:[#allocation1] sm:$0xff pattern:$0x75316420]  ;;  %v536_v2 = vld.sshfl [vmem:[#allocation1 + $0x8] sm:$0xff pattern:$0x75316420] }
  0xd1   : > { %v802_v33 = vsub.f32 %v330_v6, %v359_v28  ;;  %v808_v36 = vsub.f32 %v332_v7, %v359_v28  ;;  %v539_v3 = vpack.c.bf16 %v535_v1, %v535_v1  ;;  %v540_v4 = vpack.c.bf16 %v536_v2, %v536_v2 }
  0xd2   : > { %v366_v34 = vmul.f32 %v794_v29, %v794_v29  ;;  %v367_v35 = vmul.f32 %v796_v30, %v796_v30  ;;  %v368_v37 = vmul.f32 %v798_v31, %v798_v31  ;;  %v370_v39 = vmul.f32 %v800_v32, %v800_v32 }
  0xd3   : > { %v369_v40 = vmul.f32 %v802_v33, %v802_v33  ;;  %v371_v42 = vmul.f32 %v808_v36, %v808_v36  ;;  %v546_v6 = vsel %vm336_vm0, %v539_v3, 0  ;;  %v549_v7 = vsel %vm336_vm0, %v540_v4, 0 }
  0xd4   : > { %v372_v38 = vadd.f32 %v367_v35, %v366_v34  ;;  %v375_v44 = vsel %vm336_vm0, %v370_v39, 0.0  ;;  %558 = vmatpush.bf16.msra.mxu2 %v546_v6  ;;  %571 = vmatpush.bf16.msra.mxu3 %v549_v7 }
  0xd5   : > { %v377_v46 = vsel %vm336_vm0, %v371_v42, 0.0  ;;  %vm590_vm0 = vcmask 1043456  }
  0xd6   : > { %v373_v41 = vadd.f32 %v372_v38, %v368_v37 }
  0xd7   : > { %675 = vmatmul.msk.bf16.vlgmr.msra.gmra.mxu2 %vm541_vm5, %v531_v8  ;;  %676 = vmatmul.msk.bf16.vlgmr.msra.gmra.mxu3 %vm541_vm5, %v531_v8 }
  0xd8   : > { %v374_v43 = vadd.f32 %v373_v41, %v369_v40 }
  0xda   : > { %v376_v45 = vadd.f32 %v375_v44, %v374_v43 }
  0xdc   : > { %v378_v47 = vadd.f32 %v377_v46, %v376_v45  ;;  %v441_v45 = vld [vmem:[%s888_s3] sm:$0xf] }
  0xde   : > { %379 = vadd.xlane.f32.xlu0 %v378_v47 }
 0x151   : > { %v380_v48 = vpop.xlane.xlu0 %379 }
 0x152   : > { %v381_v49 = vrot.slane %v380_v48, 4 }
 0x154   : > { %v382_v50 = vadd.f32 %v381_v49, %v380_v48  ;;  %v442_v48 = vpack.c.bf16 %v441_v45, %v441_v45 }
 0x156   : > { %v383_v51 = vrot.slane %v382_v50, 2 }
 0x158   : > { %v384_v52 = vadd.f32 %v383_v51, %v382_v50  ;;  %v451_v51 = vpop.permute.xlu1 %450 }
 0x15a   : > { %v385_v53 = vrot.slane %v384_v52, 1  ;;  %v560_v49 = vpop.f32.mrf.mxu2  ;;  %v573_v50 = vpop.f32.mrf.mxu3 }
 0x15c   : > { %v386_v54 = vadd.f32 %v385_v53, %v384_v52 }
 0x15e   : > { %686 = vpush %v386_v54 }
 0x18f   : > { %s687_s18 = spop %686 }
 0x190   : > { %s396_s19 = smul.f32 %s687_s18, %s791_s16  ;;  %s325_s18 = scalar_lea.vmem %s893_s8, %s679_s30 }
 0x192   : > { %s397_s20 = sadd.f32 1e-05, %s396_s19 }
 0x194   : > { %v398_v55 = vstv %s397_s20 }
 0x195   : > { %704 = vrsqrt.f32 %v398_v55  ;;  %vm405_vm3 = vweird.f32 %v398_v55 }
 0x19b   : > { %v705_v56 = vpop.eup %704 }
 0x19c   : > { %v400_v57 = vmul.f32 %v705_v56, %v398_v55  ;;  %vm406_vm2 = vweird.f32 %v705_v56 }
 0x19d   : > { %vm407_vm4 = vmor %vm405_vm3, %vm406_vm2 }
 0x19e   : > { %v401_v58 = vmul.f32 %v705_v56, %v400_v57  ;;  %v575_v57 = vpop.f32.mrf.mxu3 }
 0x1a0   : > { %v402_v59 = vmul.f32 0.5, %v401_v58 }
 0x1a2   : > { %v403_v60 = vsub.f32 1.5, %v402_v59 }
 0x1a4   : > { %v404_v61 = vmul.f32 %v705_v56, %v403_v60 }
 0x1a6   : > { %v408_v62 = vsel %vm407_vm4, %v705_v56, %v404_v61  ;;  %v562_v56 = vpop.f32.mrf.mxu2 }
 0x1a7   : > { %688 = vpush %v408_v62 }
 0x1d8   : > { %s689_s29 = spop %688 }
 0x1d9   : > { %v410_v10 = vstv %s689_s29 }
 0x1da   : > { %v415_v14 = vmul.f32 %v410_v10, %v800_v32  ;;  %v416_v15 = vmul.f32 %v410_v10, %v808_v36  ;;  %v411_v16 = vmul.f32 %v410_v10, %v794_v29  ;;  %v413_v17 = vmul.f32 %v410_v10, %v798_v31  ;;  %v429_v29 = vld [vmem:[%s887_s2] sm:$0xff]  ;;  %v431_v36 = vld [vmem:[%s887_s2 + $0x10] sm:$0xff] }
 0x1db   : > { %v412_v23 = vmul.f32 %v410_v10, %v796_v30  ;;  %v414_v24 = vmul.f32 %v410_v10, %v802_v33  ;;  %v430_v30 = vld [vmem:[%s887_s2 + $0x8] sm:$0xff]  ;;  %v432_v33 = vld [vmem:[%s887_s2 + $0x18] sm:$0xff] }
 0x1dc   : > { %v427_v25 = vmul.f32 %v421_v11, %v415_v14  ;;  %v428_v26 = vmul.f32 %v422_v12, %v416_v15  ;;  %v423_v27 = vmul.f32 %v417_v13, %v411_v16  ;;  %v425_v28 = vmul.f32 %v419_v18, %v413_v17 }
 0x1dd   : > { %v424_v31 = vmul.f32 %v418_v19, %v412_v23  ;;  %v426_v32 = vmul.f32 %v420_v20, %v414_v24 }
 0x1de   : > { %v439_v34 = vadd.f32 %v433_v21, %v427_v25  ;;  %v440_v35 = vadd.f32 %v434_v22, %v428_v26  ;;  %v435_v39 = vadd.f32 %v429_v29, %v423_v27  ;;  %v437_v40 = vadd.f32 %v431_v36, %v425_v28  ;;  %v583_v26 = vpop.permute.xlu1 %582 }
 0x1df   : > { %v436_v41 = vadd.f32 %v430_v30, %v424_v31  ;;  %v438_v42 = vadd.f32 %v432_v33, %v426_v32 }
 0x1e0   : > { %v445_v37 = vpack.c.bf16 %v439_v34, %v439_v34  ;;  %v446_v38 = vpack.c.bf16 %v440_v35, %v440_v35  ;;  %v443_v46 = vpack.c.bf16 %v437_v40, %v435_v39 }
 0x1e1   : > { %v444_v47 = vpack.c.bf16 %v438_v42, %v436_v41 }
 0x1e2   : > { %v459_v43 = vsel %vm457_vm6, %v445_v37, 0  ;;  %v462_v44 = vsel %vm457_vm6, %v446_v38, 0 }
 0x1e3   : > { %470 = vmatpush.bf16.msra.mxu0 %v459_v43  ;;  %483 = vmatpush.bf16.msra.mxu1 %v462_v44 }
 0x1e7   : > { %471 = vmatpush.bf16.msra.mxu0 %v443_v46  ;;  %484 = vmatpush.bf16.msra.mxu1 %v444_v47 }
 0x1ea   : > { %671 = vmatmul.msk.bf16.vlgmr.msra.gmra.mxu0 %vm453_vm7, %v442_v48  ;;  %672 = vmatmul.msk.bf16.vlgmr.msra.gmra.mxu1 %vm453_vm7, %v442_v48 }
 0x267   : > { %v473_v52 = vpop.f32.mrf.mxu0  ;;  %v486_v53 = vpop.f32.mrf.mxu1 }
 0x268   : > { %v474_v54 = vadd.f32 %v473_v52, %v451_v51  ;;  %v487_v55 = vadd.f32 %v486_v53, %v451_v51 }
 0x26a   : > { %v673_v58 = vmul.f32 -1.442695, %v474_v54  ;;  %v674_v59 = vmul.f32 -1.442695, %v487_v55 }
 0x26c   : > { %706 = vpow2.f32 %v673_v58 }
 0x26d   : > { %708 = vpow2.f32 %v674_v59 }
 0x26f   : > { %v475_v60 = vpop.f32.mrf.mxu0  ;;  %v488_v61 = vpop.f32.mrf.mxu1 }
 0x272   : > { %v707_v62 = vpop.eup %706 }
 0x273   : > { %v709_v63 = vpop.eup %708  ;;  %v496_v0 = vadd.f32 1.0, %v707_v62 }
 0x274   : > { %v497_v1 = vadd.f32 1.0, %v709_v63 }
 0x275   : > { %710 = vrcp.f32 %v496_v0  ;;  %v509_v7 = vand.u32 2147483648, %v496_v0  ;;  %v507_v10 = vand.u32 2147483647, %v496_v0  ;;  %vm503_vm10 = vweird.f32 %v496_v0 }
 0x276   : > { %712 = vrcp.f32 %v497_v1  ;;  %v524_v11 = vand.u32 2147483648, %v497_v1  ;;  %v522_v13 = vand.u32 2147483647, %v497_v1  ;;  %vm518_vm12 = vweird.f32 %v497_v1 }
 0x277   : > { %v510_v15 = vor.u32 1.1754944e-38, %v509_v7  ;;  %vm508_vm13 = vcmp.eq.f32.partialorder %v507_v10, 8.507059e+37 }
 0x278   : > { %v525_v18 = vor.u32 1.1754944e-38, %v524_v11  ;;  %vm523_vm15 = vcmp.eq.f32.partialorder %v522_v13, 8.507059e+37 }
 0x27b   : > { %v711_v2 = vpop.eup %710 }
 0x27c   : > { %v713_v3 = vpop.eup %712  ;;  %v499_v4 = vmul.f32 %v711_v2, %v496_v0  ;;  %vm504_vm8 = vweird.f32 %v711_v2 }
 0x27d   : > { %v514_v5 = vmul.f32 %v713_v3, %v497_v1  ;;  %vm519_vm9 = vweird.f32 %v713_v3  ;;  %vm505_vm11 = vmor %vm503_vm10, %vm504_vm8 }
 0x27e   : > { %v500_v6 = vsub.f32 1.0, %v499_v4  ;;  %vm520_vm14 = vmor %vm518_vm12, %vm519_vm9 }
 0x27f   : > { %v515_v8 = vsub.f32 1.0, %v514_v5 }
 0x280   : > { %v501_v9 = vmul.f32 %v711_v2, %v500_v6 }
 0x281   : > { %v516_v12 = vmul.f32 %v713_v3, %v515_v8 }
 0x282   : > { %v502_v14 = vadd.f32 %v711_v2, %v501_v9 }
 0x283   : > { %v517_v16 = vadd.f32 %v713_v3, %v516_v12 }
 0x284   : > { %v506_v17 = vsel %vm505_vm11, %v711_v2, %v502_v14 }
 0x285   : > { %v511_v19 = vsel %vm508_vm13, %v510_v15, %v506_v17  ;;  %v521_v20 = vsel %vm520_vm14, %v713_v3, %v517_v16 }
 0x286   : > { %v528_v21 = vmul.f32 %v511_v19, %v474_v54  ;;  %v526_v22 = vsel %vm523_vm15, %v525_v18, %v521_v20 }
 0x287   : > { %v529_v23 = vmul.f32 %v526_v22, %v487_v55 }
 0x288   : > { %v577_v24 = vadd.f32 %v560_v49, %v528_v21 }
 0x289   : > { %v578_v25 = vadd.f32 %v573_v50, %v529_v23 }
 0x28a   : > { %v585_v28 = vadd.f32 %v583_v26, %v577_v24 }
 0x28b   : > { %v586_v27 = vadd.f32 %v583_v26, %v578_v25 }
 0x28d   : > { %v589_v29 = vrot.slane %v586_v27, 4 }
 0x28f   : > { %v591_v31 = vsel %vm590_vm0, %v585_v28, %v589_v29 }
 0x290   : > { %593 = vst [vmem:[%s325_s18] sm:$0xff] %v591_v31 }
 0x291 PF: > { %s18_s27 = sadd.s32 1, %s720_s27  }
 0x292   : > { %p15_p4 = scmp.ge.s32.totalorder %s18_s27, 4  }
 0x294   :  { %17 = sbr.rel (!%p15_p4) target bundleno = 1 (0x1), region = 85 }

</bundles_post_ra>
